<compile_context>
chip_gen: v5e
topology: v5e:2x2
jax: 0.10.0
libtpu: 0.0.40
codegen_flags: <defaults>
</compile_context>

<pallas_src>
import functools
import math

import jax
import jax.numpy as jnp
from jax.experimental import pallas as pl
from jax.experimental.pallas import tpu as pltpu

LEAKY_SLOPE = 0.01
BN_EPS = 1e-5


def _round_up(x, m):
    return (x + m - 1) // m * m


def _pick_tm(n, cap):
    return min(cap, _round_up(n, 8))


def _pad_rows(x, n_pad):
    n = x.shape[0]
    if n_pad == n:
        return x
    pad = [(0, n_pad - n)] + [(0, 0)] * (x.ndim - 1)
    return jnp.pad(x, pad)


# ----------------------------------------------------------------------------
# Kernel A: feature_align (5x Linear+LeakyReLU) + fused 3-branch expert matmul
# Output z = [gnn_out | text_out | cat_out]  of shape [N, 3*D]
# ----------------------------------------------------------------------------
def _align_expert_kernel(des_ref, twt_ref, num_ref, cat_ref, nfh_ref,
                         wde_ref, bde_ref, wtw_ref, btw_ref,
                         wnu_ref, bnu_ref, wca_ref, bca_ref, wnf_ref, bnf_ref,
                         ed_ref, et_ref, en_ref, ec_ref, eh_ref, eb_ref,
                         z_ref):
    def align(x_ref, w_ref, b_ref):
        y = jnp.dot(x_ref[...], w_ref[...],
                    preferred_element_type=jnp.float32) + b_ref[...]
        return jnp.where(y >= 0, y, LEAKY_SLOPE * y)

    a_des = align(des_ref, wde_ref, bde_ref)
    a_twt = align(twt_ref, wtw_ref, btw_ref)
    a_num = align(num_ref, wnu_ref, bnu_ref)
    a_cat = align(cat_ref, wca_ref, bca_ref)
    a_nfh = align(nfh_ref, wnf_ref, bnf_ref)

    # Block-structured fused expert matmul (gnn | text | cat) without re-reading
    # the aligned features from HBM.
    z = (jnp.dot(a_des, ed_ref[...], preferred_element_type=jnp.float32)
         + jnp.dot(a_twt, et_ref[...], preferred_element_type=jnp.float32)
         + jnp.dot(a_num, en_ref[...], preferred_element_type=jnp.float32)
         + jnp.dot(a_cat, ec_ref[...], preferred_element_type=jnp.float32)
         + jnp.dot(a_nfh, eh_ref[...], preferred_element_type=jnp.float32)
         + eb_ref[...])
    z_ref[...] = jnp.where(z >= 0, z, LEAKY_SLOPE * z)


def pallas_align_experts(des, twt, num, cat, nfh, p, *, A, D, tm_cap=512):
    N = des.shape[0]
    TD = 3 * D
    tm = _pick_tm(N, tm_cap)
    n_pad = _round_up(N, tm)

    des_p = _pad_rows(des.astype(jnp.bfloat16), n_pad)
    twt_p = _pad_rows(twt.astype(jnp.bfloat16), n_pad)
    num_p = _pad_rows(num, n_pad)
    cat_p = _pad_rows(cat, n_pad)
    nfh_p = _pad_rows(nfh, n_pad)

    def rowspec(k):
        return pl.BlockSpec((tm, k), lambda i: (i, 0))

    def repspec(shape):
        nd = len(shape)
        return pl.BlockSpec(shape, lambda i: (0,) * nd)

    in_specs = [
        rowspec(des.shape[1]), rowspec(twt.shape[1]), rowspec(num.shape[1]),
        rowspec(cat.shape[1]), rowspec(nfh.shape[1]),
        repspec((des.shape[1], A)), repspec((1, A)),
        repspec((twt.shape[1], A)), repspec((1, A)),
        repspec((num.shape[1], A)), repspec((1, A)),
        repspec((cat.shape[1], A)), repspec((1, A)),
        repspec((nfh.shape[1], A)), repspec((1, A)),
        repspec((A, TD)), repspec((A, TD)), repspec((A, TD)),
        repspec((A, TD)), repspec((A, TD)),
        repspec((1, TD)),
    ]

    out = pl.pallas_call(
        _align_expert_kernel,
        out_shape=jax.ShapeDtypeStruct((n_pad, TD), jnp.float32),
        grid=(n_pad // tm,),
        in_specs=in_specs,
        out_specs=pl.BlockSpec((tm, TD), lambda i: (i, 0)),
        compiler_params=pltpu.CompilerParams(dimension_semantics=("parallel",)),
    )(des_p, twt_p, num_p, cat_p, nfh_p,
      p['al_des_w'], p['al_des_b'].reshape(1, A),
      p['al_twt_w'], p['al_twt_b'].reshape(1, A),
      p['al_num_w'], p['al_num_b'].reshape(1, A),
      p['al_cat_w'], p['al_cat_b'].reshape(1, A),
      p['al_nfh_w'], p['al_nfh_b'].reshape(1, A),
      p['exp_w_des'], p['exp_w_twt'], p['exp_w_num'],
      p['exp_w_cat'], p['exp_w_nfh'],
      p['exp_b'].reshape(1, TD))
    return out[:N] if n_pad != N else out


# ----------------------------------------------------------------------------
# Kernel B: (bn1 already folded into wq/wk/wv) single-head attention over the
# 3 branch tokens + FixedPooling(6) layout.  Emits feat [N, 3D + 36] directly.
# ----------------------------------------------------------------------------
def _fusion_feat_kernel(z_ref, wq_ref, bq_ref, wk_ref, bk_ref, wv_ref, bv_ref,
                        f_ref, *, D, T):
    z = z_ref[...]                                   # [tm, T*D] f32
    tm = z.shape[0]

    q, k, v = [], [], []
    for t in range(T):
        zt = z[:, t * D:(t + 1) * D]
        q.append(jnp.dot(zt, wq_ref[...], preferred_element_type=jnp.float32) + bq_ref[...])
        k.append(jnp.dot(zt, wk_ref[...], preferred_element_type=jnp.float32) + bk_ref[...])
        v.append(jnp.dot(zt, wv_ref[...], preferred_element_type=jnp.float32) + bv_ref[...])

    inv_sqrt_d = 1.0 / math.sqrt(D)
    base = T * D
    # FixedPooling(6): the (T,T) attention map is padded to (6,6) then 1x1-maxpooled
    # (identity).  Zero the whole 36-wide region first; real values written below.
    f_ref[:, base:base + 36] = jnp.zeros((tm, 36), jnp.float32)

    for t in range(T):
        s = [jnp.sum(q[t] * k[u], axis=-1, keepdims=True) * inv_sqrt_d
             for u in range(T)]
        m = s[0]
        for u in range(1, T):
            m = jnp.maximum(m, s[u])
        e = [jnp.exp(su - m) for su in s]
        denom = e[0]
        for u in range(1, T):
            denom = denom + e[u]
        inv = pl.reciprocal(denom, approx=True)
        a = [eu * inv for eu in e]                   # T x [tm, 1]
        yt = a[0] * v[0]
        for u in range(1, T):
            yt = yt + a[u] * v[u]
        f_ref[:, t * D:(t + 1) * D] = yt             # y.reshape(N, T*D) layout
        for u in range(T):
            col = base + 6 * t + u
            f_ref[:, col:col + 1] = a[u]             # padded 6x6 map, row-major


def pallas_fusion_feat(z, wq, bq, wk, bk, wv, bv, *, D, T=3, tm_cap=1024):
    N = z.shape[0]
    TD = T * D
    F = TD + 36
    tm = _pick_tm(N, tm_cap)
    n_pad = _round_up(N, tm)
    zp = _pad_rows(z, n_pad)

    out = pl.pallas_call(
        functools.partial(_fusion_feat_kernel, D=D, T=T),
        out_shape=jax.ShapeDtypeStruct((n_pad, F), jnp.float32),
        grid=(n_pad // tm,),
        in_specs=[
            pl.BlockSpec((tm, TD), lambda i: (i, 0)),
            pl.BlockSpec((D, D), lambda i: (0, 0)),
            pl.BlockSpec((1, D), lambda i: (0, 0)),
            pl.BlockSpec((D, D), lambda i: (0, 0)),
            pl.BlockSpec((1, D), lambda i: (0, 0)),
            pl.BlockSpec((D, D), lambda i: (0, 0)),
            pl.BlockSpec((1, D), lambda i: (0, 0)),
        ],
        out_specs=pl.BlockSpec((tm, F), lambda i: (i, 0)),
        compiler_params=pltpu.CompilerParams(dimension_semantics=("parallel",)),
    )(zp, wq, bq.reshape(1, D), wk, bk.reshape(1, D), wv, bv.reshape(1, D))
    return out[:N] if n_pad != N else out


# ----------------------------------------------------------------------------
# Kernel C: row-tiled Linear (bn2 is folded into the weight/bias by the caller)
# ----------------------------------------------------------------------------
def _linear_kernel(x_ref, w_ref, b_ref, o_ref):
    y = jnp.dot(x_ref[...], w_ref[...],
                preferred_element_type=jnp.float32) + b_ref[...]
    o_ref[...] = y.astype(o_ref.dtype)


def pallas_linear(x, w, b, *, tm_cap=512):
    N, K = x.shape
    C = w.shape[1]
    tm = _pick_tm(N, tm_cap)
    n_pad = _round_up(N, tm)
    xp = _pad_rows(x, n_pad)
    out = pl.pallas_call(
        _linear_kernel,
        out_shape=jax.ShapeDtypeStruct((n_pad, C), jnp.float32),
        grid=(n_pad // tm,),
        in_specs=[
            pl.BlockSpec((tm, K), lambda i: (i, 0)),
            pl.BlockSpec((K, C), lambda i: (0, 0)),
            pl.BlockSpec((1, C), lambda i: (0, 0)),
        ],
        out_specs=pl.BlockSpec((tm, C), lambda i: (i, 0)),
        compiler_params=pltpu.CompilerParams(dimension_semantics=("parallel",)),
    )(xp, w, b.reshape(1, C))
    return out[:N] if n_pad != N else out


# ----------------------------------------------------------------------------
# Model
# ----------------------------------------------------------------------------
class AllInOnePallas:
    def __init__(self, output_size=16, align_size=32, key=jax.random.PRNGKey(1)):
        self.output_size = output_size
        self.align_size = align_size
        D, A = output_size, align_size
        feat_dim = 3 * D + 6 * 6

        def lin(k, fan_in, fan_out, scale=0.05):
            kw, kb = jax.random.split(k)
            return (scale * jax.random.normal(kw, (fan_in, fan_out), jnp.float32),
                    scale * jax.random.normal(kb, (fan_out,), jnp.float32))

        keys = jax.random.split(key, 12)
        p = {}
        # feature_align (exact).  768-wide weights stored in bf16 (f32 accumulation).
        w, b = lin(keys[0], 768, A); p['al_des_w'] = w.astype(jnp.bfloat16); p['al_des_b'] = b
        w, b = lin(keys[1], 768, A); p['al_twt_w'] = w.astype(jnp.bfloat16); p['al_twt_b'] = b
        p['al_num_w'], p['al_num_b'] = lin(keys[2], 5, A)
        p['al_cat_w'], p['al_cat_b'] = lin(keys[3], 3, A)
        p['al_nfh_w'], p['al_nfh_b'] = lin(keys[4], 9, A)
        # TODO(synk): BotRGCN_fmoe / text MoE / DeeProBot_MoE sources not provided;
        # each branch is a Linear+LeakyReLU surrogate (gnn: 4A->D on [des,twt,num,cat],
        # text: 2A->D on [twt,des], cat: 2A->D on [nfh,cat]).
        gnn_w, gnn_b = lin(keys[5], 4 * A, D)
        txt_w, txt_b = lin(keys[6], 2 * A, D)
        cat_w, cat_b = lin(keys[7], 2 * A, D)
        zAD = jnp.zeros((A, D), jnp.float32)
        # block-structured fused expert weights, split per aligned input
        p['exp_w_des'] = jnp.concatenate([gnn_w[0:A],        txt_w[A:2 * A], zAD], axis=1)
        p['exp_w_twt'] = jnp.concatenate([gnn_w[A:2 * A],    txt_w[0:A],     zAD], axis=1)
        p['exp_w_num'] = jnp.concatenate([gnn_w[2 * A:3 * A], zAD,           zAD], axis=1)
        p['exp_w_cat'] = jnp.concatenate([gnn_w[3 * A:4 * A], zAD,           cat_w[A:2 * A]], axis=1)
        p['exp_w_nfh'] = jnp.concatenate([zAD,               zAD,            cat_w[0:A]], axis=1)
        p['exp_b'] = jnp.concatenate([gnn_b, txt_b, cat_b])
        # bn1 / fusion (LModel surrogate: single-head SDPA) / bn2 / classifier
        p['bn1_g'] = jnp.ones((D,), jnp.float32)
        p['bn1_b'] = jnp.zeros((D,), jnp.float32)
        p['wq'], _ = lin(keys[8], D, D)
        p['wk'], _ = lin(keys[9], D, D)
        p['wv'], _ = lin(keys[10], D, D)
        p['bn2_g'] = jnp.ones((feat_dim,), jnp.float32)
        p['bn2_b'] = jnp.zeros((feat_dim,), jnp.float32)
        p['cls_w'], p['cls_b'] = lin(keys[11], feat_dim, 2)
        self.params = p

    def __call__(self, des, tweets, num_prop, cat_prop, num_for_h,
                 edge_index, edge_type):
        p = self.params
        D, A, T = self.output_size, self.align_size, 3
        N = des.shape[0]
        n_keep = min(11826, N)        # reference slices each branch to [:11826]

        # TODO(synk): graph message passing of the gnn MoE is not reproducible from
        # the spec, so edge_index / edge_type are unused and the [:n_keep] slice is
        # applied to the node features up front (identity at this test size).
        des_k, twt_k = des[:n_keep], tweets[:n_keep]
        num_k, cat_k, nfh_k = num_prop[:n_keep], cat_prop[:n_keep], num_for_h[:n_keep]

        # ---- Kernel A: feature_align + fused 3-branch experts -> z [n, 3D] ----
        z = pallas_align_experts(des_k, twt_k, num_k, cat_k, nfh_k, p, A=A, D=D)

        exp_loss = jnp.zeros((), jnp.float32)  # TODO(synk): MoE aux losses undefined

        # ---- bn1 (training batch stats over (N, 3) per channel D), folded into
        #      the q/k/v projections of the fusion attention ----
        z3 = z.reshape(n_keep, T, D)
        m1 = jnp.mean(z3, axis=(0, 1))
        v1 = jnp.mean((z3 - m1) ** 2, axis=(0, 1))
        s1 = p['bn1_g'] * jax.lax.rsqrt(v1 + BN_EPS)
        sh1 = p['bn1_b'] - m1 * s1
        wq, bq = s1[:, None] * p['wq'], sh1 @ p['wq']
        wk, bk = s1[:, None] * p['wk'], sh1 @ p['wk']
        wv, bv = s1[:, None] * p['wv'], sh1 @ p['wv']
        # (dropout output in the reference forward is overwritten -> dead code)

        # ---- Kernel B: attention fusion + FixedPooling(6) layout -> feat [n, 3D+36] ----
        feat = pallas_fusion_feat(z, wq, bq, wk, bk, wv, bv, D=D, T=T)

        # ---- bn2 (training batch stats), folded into the final classifier ----
        m2 = jnp.mean(feat, axis=0)
        v2 = jnp.mean((feat - m2) ** 2, axis=0)
        s2 = p['bn2_g'] * jax.lax.rsqrt(v2 + BN_EPS)
        sh2 = p['bn2_b'] - m2 * s2
        wc = s2[:, None] * p['cls_w']
        bc = sh2 @ p['cls_w'] + p['cls_b']

        # ---- Kernel C: classifier ----
        logits = pallas_linear(feat, wc, bc)
        return logits, exp_loss


# ----------------------------------------------------------------------------
if __name__ == "__main__":
    N, E = 64, 128
    key = jax.random.PRNGKey(0)
    ks = jax.random.split(key, 7)
    des_tensor = jax.random.normal(ks[0], (N, 768), jnp.float32)
    tweets_tensor = jax.random.normal(ks[1], (N, 768), jnp.float32)
    num_prop = jax.random.normal(ks[2], (N, 5), jnp.float32)
    category_prop = jax.random.normal(ks[3], (N, 3), jnp.float32)
    num_for_h = jax.random.normal(ks[4], (N, 9), jnp.float32)
    edge_index = jax.random.randint(ks[5], (2, E), 0, N, jnp.int32)
    edge_type = jax.random.randint(ks[6], (E,), 0, 2, jnp.int32)

    model = AllInOnePallas(output_size=16, align_size=32)
    logits, exp_loss = model(des_tensor, tweets_tensor, num_prop, category_prop,
                             num_for_h, edge_index, edge_type)
    jax.block_until_ready(logits)
    jax.block_until_ready(exp_loss)
    assert logits.shape == (N, 2) and logits.dtype == jnp.float32
    print("KERNEL_OK")
</pallas_src>

<mosaic_0001>
module attributes {stable_mosaic.version = 11 : i64} {
  func.func @_align_expert_kernel(%arg0: i32, %arg1: memref<64x768xbf16, #tpu.memory_space<vmem>>, %arg2: memref<64x768xbf16, #tpu.memory_space<vmem>>, %arg3: memref<64x5xf32, #tpu.memory_space<vmem>>, %arg4: memref<64x3xf32, #tpu.memory_space<vmem>>, %arg5: memref<64x9xf32, #tpu.memory_space<vmem>>, %arg6: memref<768x32xbf16, #tpu.memory_space<vmem>>, %arg7: memref<1x32xf32, #tpu.memory_space<vmem>>, %arg8: memref<768x32xbf16, #tpu.memory_space<vmem>>, %arg9: memref<1x32xf32, #tpu.memory_space<vmem>>, %arg10: memref<5x32xf32, #tpu.memory_space<vmem>>, %arg11: memref<1x32xf32, #tpu.memory_space<vmem>>, %arg12: memref<3x32xf32, #tpu.memory_space<vmem>>, %arg13: memref<1x32xf32, #tpu.memory_space<vmem>>, %arg14: memref<9x32xf32, #tpu.memory_space<vmem>>, %arg15: memref<1x32xf32, #tpu.memory_space<vmem>>, %arg16: memref<32x48xf32, #tpu.memory_space<vmem>>, %arg17: memref<32x48xf32, #tpu.memory_space<vmem>>, %arg18: memref<32x48xf32, #tpu.memory_space<vmem>>, %arg19: memref<32x48xf32, #tpu.memory_space<vmem>>, %arg20: memref<32x48xf32, #tpu.memory_space<vmem>>, %arg21: memref<1x48xf32, #tpu.memory_space<vmem>>, %arg22: memref<64x48xf32, #tpu.memory_space<vmem>>) attributes {dimension_semantics = [#tpu.dimension_semantics<parallel>], iteration_bounds = array<i64: 1>, scalar_prefetch = 0 : i64, scratch_operands = 0 : i64, tpu.core_type = #tpu.core_type<tc>, window_params = [{transform_indices = @transform_0, window_bounds = array<i64: 64, 768>}, {transform_indices = @transform_1, window_bounds = array<i64: 64, 768>}, {transform_indices = @transform_2, window_bounds = array<i64: 64, 5>}, {transform_indices = @transform_3, window_bounds = array<i64: 64, 3>}, {transform_indices = @transform_4, window_bounds = array<i64: 64, 9>}, {pipeline_mode = #tpu.pipeline_mode<synchronous>, transform_indices = @transform_5, window_bounds = array<i64: 768, 32>}, {pipeline_mode = #tpu.pipeline_mode<synchronous>, transform_indices = @transform_6, window_bounds = array<i64: 1, 32>}, {pipeline_mode = #tpu.pipeline_mode<synchronous>, transform_indices = @transform_7, window_bounds = array<i64: 768, 32>}, {pipeline_mode = #tpu.pipeline_mode<synchronous>, transform_indices = @transform_8, window_bounds = array<i64: 1, 32>}, {pipeline_mode = #tpu.pipeline_mode<synchronous>, transform_indices = @transform_9, window_bounds = array<i64: 5, 32>}, {pipeline_mode = #tpu.pipeline_mode<synchronous>, transform_indices = @transform_10, window_bounds = array<i64: 1, 32>}, {pipeline_mode = #tpu.pipeline_mode<synchronous>, transform_indices = @transform_11, window_bounds = array<i64: 3, 32>}, {pipeline_mode = #tpu.pipeline_mode<synchronous>, transform_indices = @transform_12, window_bounds = array<i64: 1, 32>}, {pipeline_mode = #tpu.pipeline_mode<synchronous>, transform_indices = @transform_13, window_bounds = array<i64: 9, 32>}, {pipeline_mode = #tpu.pipeline_mode<synchronous>, transform_indices = @transform_14, window_bounds = array<i64: 1, 32>}, {pipeline_mode = #tpu.pipeline_mode<synchronous>, transform_indices = @transform_15, window_bounds = array<i64: 32, 48>}, {pipeline_mode = #tpu.pipeline_mode<synchronous>, transform_indices = @transform_16, window_bounds = array<i64: 32, 48>}, {pipeline_mode = #tpu.pipeline_mode<synchronous>, transform_indices = @transform_17, window_bounds = array<i64: 32, 48>}, {pipeline_mode = #tpu.pipeline_mode<synchronous>, transform_indices = @transform_18, window_bounds = array<i64: 32, 48>}, {pipeline_mode = #tpu.pipeline_mode<synchronous>, transform_indices = @transform_19, window_bounds = array<i64: 32, 48>}, {pipeline_mode = #tpu.pipeline_mode<synchronous>, transform_indices = @transform_20, window_bounds = array<i64: 1, 48>}, {transform_indices = @transform_21, window_bounds = array<i64: 64, 48>}]} {
    %c0 = arith.constant 0 : index
    %c0_0 = arith.constant 0 : index
    %0 = vector.load %arg1[%c0, %c0_0] : memref<64x768xbf16, #tpu.memory_space<vmem>>, vector<64x768xbf16>
    %c0_1 = arith.constant 0 : index
    %c0_2 = arith.constant 0 : index
    %1 = vector.load %arg6[%c0_1, %c0_2] : memref<768x32xbf16, #tpu.memory_space<vmem>>, vector<768x32xbf16>
    %cst = arith.constant dense<0.000000e+00> : vector<64x32xf32>
    %2 = tpu.matmul %0, %1, %cst {dimension_numbers = #tpu.dot_dimension_numbers<[1], [0], [0], [1], [0, 0, 1, 1], [], []>} : vector<64x768xbf16>, vector<768x32xbf16>, vector<64x32xf32> -> vector<64x32xf32>
    %c0_3 = arith.constant 0 : index
    %c0_4 = arith.constant 0 : index
    %3 = vector.load %arg7[%c0_3, %c0_4] : memref<1x32xf32, #tpu.memory_space<vmem>>, vector<1x32xf32>
    %4 = vector.broadcast %3 : vector<1x32xf32> to vector<64x32xf32>
    %5 = arith.addf %2, %4 : vector<64x32xf32>
    %cst_5 = arith.constant 0.000000e+00 : f32
    %6 = vector.broadcast %cst_5 : f32 to vector<64x32xf32>
    %7 = arith.cmpf oge, %5, %6 : vector<64x32xf32>
    %cst_6 = arith.constant 0.00999999977 : f32
    %8 = vector.broadcast %cst_6 : f32 to vector<64x32xf32>
    %9 = arith.mulf %8, %5 : vector<64x32xf32>
    %10 = arith.select %7, %5, %9 : vector<64x32xi1>, vector<64x32xf32>
    %c0_7 = arith.constant 0 : index
    %c0_8 = arith.constant 0 : index
    %11 = vector.load %arg2[%c0_7, %c0_8] : memref<64x768xbf16, #tpu.memory_space<vmem>>, vector<64x768xbf16>
    %c0_9 = arith.constant 0 : index
    %c0_10 = arith.constant 0 : index
    %12 = vector.load %arg8[%c0_9, %c0_10] : memref<768x32xbf16, #tpu.memory_space<vmem>>, vector<768x32xbf16>
    %cst_11 = arith.constant dense<0.000000e+00> : vector<64x32xf32>
    %13 = tpu.matmul %11, %12, %cst_11 {dimension_numbers = #tpu.dot_dimension_numbers<[1], [0], [0], [1], [0, 0, 1, 1], [], []>} : vector<64x768xbf16>, vector<768x32xbf16>, vector<64x32xf32> -> vector<64x32xf32>
    %c0_12 = arith.constant 0 : index
    %c0_13 = arith.constant 0 : index
    %14 = vector.load %arg9[%c0_12, %c0_13] : memref<1x32xf32, #tpu.memory_space<vmem>>, vector<1x32xf32>
    %15 = vector.broadcast %14 : vector<1x32xf32> to vector<64x32xf32>
    %16 = arith.addf %13, %15 : vector<64x32xf32>
    %cst_14 = arith.constant 0.000000e+00 : f32
    %17 = vector.broadcast %cst_14 : f32 to vector<64x32xf32>
    %18 = arith.cmpf oge, %16, %17 : vector<64x32xf32>
    %cst_15 = arith.constant 0.00999999977 : f32
    %19 = vector.broadcast %cst_15 : f32 to vector<64x32xf32>
    %20 = arith.mulf %19, %16 : vector<64x32xf32>
    %21 = arith.select %18, %16, %20 : vector<64x32xi1>, vector<64x32xf32>
    %c0_16 = arith.constant 0 : index
    %c0_17 = arith.constant 0 : index
    %22 = vector.load %arg3[%c0_16, %c0_17] : memref<64x5xf32, #tpu.memory_space<vmem>>, vector<64x5xf32>
    %c0_18 = arith.constant 0 : index
    %c0_19 = arith.constant 0 : index
    %23 = vector.load %arg10[%c0_18, %c0_19] : memref<5x32xf32, #tpu.memory_space<vmem>>, vector<5x32xf32>
    %cst_20 = arith.constant dense<0.000000e+00> : vector<64x32xf32>
    %24 = tpu.matmul %22, %23, %cst_20 {dimension_numbers = #tpu.dot_dimension_numbers<[1], [0], [0], [1], [0, 0, 1, 1], [], []>} : vector<64x5xf32>, vector<5x32xf32>, vector<64x32xf32> -> vector<64x32xf32>
    %c0_21 = arith.constant 0 : index
    %c0_22 = arith.constant 0 : index
    %25 = vector.load %arg11[%c0_21, %c0_22] : memref<1x32xf32, #tpu.memory_space<vmem>>, vector<1x32xf32>
    %26 = vector.broadcast %25 : vector<1x32xf32> to vector<64x32xf32>
    %27 = arith.addf %24, %26 : vector<64x32xf32>
    %cst_23 = arith.constant 0.000000e+00 : f32
    %28 = vector.broadcast %cst_23 : f32 to vector<64x32xf32>
    %29 = arith.cmpf oge, %27, %28 : vector<64x32xf32>
    %cst_24 = arith.constant 0.00999999977 : f32
    %30 = vector.broadcast %cst_24 : f32 to vector<64x32xf32>
    %31 = arith.mulf %30, %27 : vector<64x32xf32>
    %32 = arith.select %29, %27, %31 : vector<64x32xi1>, vector<64x32xf32>
    %c0_25 = arith.constant 0 : index
    %c0_26 = arith.constant 0 : index
    %33 = vector.load %arg4[%c0_25, %c0_26] : memref<64x3xf32, #tpu.memory_space<vmem>>, vector<64x3xf32>
    %c0_27 = arith.constant 0 : index
    %c0_28 = arith.constant 0 : index
    %34 = vector.load %arg12[%c0_27, %c0_28] : memref<3x32xf32, #tpu.memory_space<vmem>>, vector<3x32xf32>
    %cst_29 = arith.constant dense<0.000000e+00> : vector<64x32xf32>
    %35 = tpu.matmul %33, %34, %cst_29 {dimension_numbers = #tpu.dot_dimension_numbers<[1], [0], [0], [1], [0, 0, 1, 1], [], []>} : vector<64x3xf32>, vector<3x32xf32>, vector<64x32xf32> -> vector<64x32xf32>
    %c0_30 = arith.constant 0 : index
    %c0_31 = arith.constant 0 : index
    %36 = vector.load %arg13[%c0_30, %c0_31] : memref<1x32xf32, #tpu.memory_space<vmem>>, vector<1x32xf32>
    %37 = vector.broadcast %36 : vector<1x32xf32> to vector<64x32xf32>
    %38 = arith.addf %35, %37 : vector<64x32xf32>
    %cst_32 = arith.constant 0.000000e+00 : f32
    %39 = vector.broadcast %cst_32 : f32 to vector<64x32xf32>
    %40 = arith.cmpf oge, %38, %39 : vector<64x32xf32>
    %cst_33 = arith.constant 0.00999999977 : f32
    %41 = vector.broadcast %cst_33 : f32 to vector<64x32xf32>
    %42 = arith.mulf %41, %38 : vector<64x32xf32>
    %43 = arith.select %40, %38, %42 : vector<64x32xi1>, vector<64x32xf32>
    %c0_34 = arith.constant 0 : index
    %c0_35 = arith.constant 0 : index
    %44 = vector.load %arg5[%c0_34, %c0_35] : memref<64x9xf32, #tpu.memory_space<vmem>>, vector<64x9xf32>
    %c0_36 = arith.constant 0 : index
    %c0_37 = arith.constant 0 : index
    %45 = vector.load %arg14[%c0_36, %c0_37] : memref<9x32xf32, #tpu.memory_space<vmem>>, vector<9x32xf32>
    %cst_38 = arith.constant dense<0.000000e+00> : vector<64x32xf32>
    %46 = tpu.matmul %44, %45, %cst_38 {dimension_numbers = #tpu.dot_dimension_numbers<[1], [0], [0], [1], [0, 0, 1, 1], [], []>} : vector<64x9xf32>, vector<9x32xf32>, vector<64x32xf32> -> vector<64x32xf32>
    %c0_39 = arith.constant 0 : index
    %c0_40 = arith.constant 0 : index
    %47 = vector.load %arg15[%c0_39, %c0_40] : memref<1x32xf32, #tpu.memory_space<vmem>>, vector<1x32xf32>
    %48 = vector.broadcast %47 : vector<1x32xf32> to vector<64x32xf32>
    %49 = arith.addf %46, %48 : vector<64x32xf32>
    %cst_41 = arith.constant 0.000000e+00 : f32
    %50 = vector.broadcast %cst_41 : f32 to vector<64x32xf32>
    %51 = arith.cmpf oge, %49, %50 : vector<64x32xf32>
    %cst_42 = arith.constant 0.00999999977 : f32
    %52 = vector.broadcast %cst_42 : f32 to vector<64x32xf32>
    %53 = arith.mulf %52, %49 : vector<64x32xf32>
    %54 = arith.select %51, %49, %53 : vector<64x32xi1>, vector<64x32xf32>
    %c0_43 = arith.constant 0 : index
    %c0_44 = arith.constant 0 : index
    %55 = vector.load %arg16[%c0_43, %c0_44] : memref<32x48xf32, #tpu.memory_space<vmem>>, vector<32x48xf32>
    %cst_45 = arith.constant dense<0.000000e+00> : vector<64x48xf32>
    %56 = tpu.matmul %10, %55, %cst_45 {dimension_numbers = #tpu.dot_dimension_numbers<[1], [0], [0], [1], [0, 0, 1, 1], [], []>} : vector<64x32xf32>, vector<32x48xf32>, vector<64x48xf32> -> vector<64x48xf32>
    %c0_46 = arith.constant 0 : index
    %c0_47 = arith.constant 0 : index
    %57 = vector.load %arg17[%c0_46, %c0_47] : memref<32x48xf32, #tpu.memory_space<vmem>>, vector<32x48xf32>
    %cst_48 = arith.constant dense<0.000000e+00> : vector<64x48xf32>
    %58 = tpu.matmul %21, %57, %cst_48 {dimension_numbers = #tpu.dot_dimension_numbers<[1], [0], [0], [1], [0, 0, 1, 1], [], []>} : vector<64x32xf32>, vector<32x48xf32>, vector<64x48xf32> -> vector<64x48xf32>
    %59 = arith.addf %56, %58 : vector<64x48xf32>
    %c0_49 = arith.constant 0 : index
    %c0_50 = arith.constant 0 : index
    %60 = vector.load %arg18[%c0_49, %c0_50] : memref<32x48xf32, #tpu.memory_space<vmem>>, vector<32x48xf32>
    %cst_51 = arith.constant dense<0.000000e+00> : vector<64x48xf32>
    %61 = tpu.matmul %32, %60, %cst_51 {dimension_numbers = #tpu.dot_dimension_numbers<[1], [0], [0], [1], [0, 0, 1, 1], [], []>} : vector<64x32xf32>, vector<32x48xf32>, vector<64x48xf32> -> vector<64x48xf32>
    %62 = arith.addf %59, %61 : vector<64x48xf32>
    %c0_52 = arith.constant 0 : index
    %c0_53 = arith.constant 0 : index
    %63 = vector.load %arg19[%c0_52, %c0_53] : memref<32x48xf32, #tpu.memory_space<vmem>>, vector<32x48xf32>
    %cst_54 = arith.constant dense<0.000000e+00> : vector<64x48xf32>
    %64 = tpu.matmul %43, %63, %cst_54 {dimension_numbers = #tpu.dot_dimension_numbers<[1], [0], [0], [1], [0, 0, 1, 1], [], []>} : vector<64x32xf32>, vector<32x48xf32>, vector<64x48xf32> -> vector<64x48xf32>
    %65 = arith.addf %62, %64 : vector<64x48xf32>
    %c0_55 = arith.constant 0 : index
    %c0_56 = arith.constant 0 : index
    %66 = vector.load %arg20[%c0_55, %c0_56] : memref<32x48xf32, #tpu.memory_space<vmem>>, vector<32x48xf32>
    %cst_57 = arith.constant dense<0.000000e+00> : vector<64x48xf32>
    %67 = tpu.matmul %54, %66, %cst_57 {dimension_numbers = #tpu.dot_dimension_numbers<[1], [0], [0], [1], [0, 0, 1, 1], [], []>} : vector<64x32xf32>, vector<32x48xf32>, vector<64x48xf32> -> vector<64x48xf32>
    %68 = arith.addf %65, %67 : vector<64x48xf32>
    %c0_58 = arith.constant 0 : index
    %c0_59 = arith.constant 0 : index
    %69 = vector.load %arg21[%c0_58, %c0_59] : memref<1x48xf32, #tpu.memory_space<vmem>>, vector<1x48xf32>
    %70 = vector.broadcast %69 : vector<1x48xf32> to vector<64x48xf32>
    %71 = arith.addf %68, %70 : vector<64x48xf32>
    %cst_60 = arith.constant 0.000000e+00 : f32
    %72 = vector.broadcast %cst_60 : f32 to vector<64x48xf32>
    %73 = arith.cmpf oge, %71, %72 : vector<64x48xf32>
    %cst_61 = arith.constant 0.00999999977 : f32
    %74 = vector.broadcast %cst_61 : f32 to vector<64x48xf32>
    %75 = arith.mulf %74, %71 : vector<64x48xf32>
    %76 = arith.select %73, %71, %75 : vector<64x48xi1>, vector<64x48xf32>
    %c0_62 = arith.constant 0 : index
    %c0_63 = arith.constant 0 : index
    %77 = vector.load %arg22[%c0_62, %c0_63] : memref<64x48xf32, #tpu.memory_space<vmem>>, vector<64x48xf32>
    tpu.vector_store %arg22[%c0_62, %c0_63], %76 {strides = array<i32>} : memref<64x48xf32, #tpu.memory_space<vmem>>, vector<64x48xf32>,
    return
  }
  func.func @transform_0(%arg0: i32) -> (i32, i32) {
    %c0_i32 = arith.constant 0 : i32
    %c0_i32_0 = arith.constant 0 : i32
    return %arg0, %c0_i32 : i32, i32
  }
  func.func @transform_1(%arg0: i32) -> (i32, i32) {
    %c0_i32 = arith.constant 0 : i32
    %c0_i32_0 = arith.constant 0 : i32
    return %arg0, %c0_i32 : i32, i32
  }
  func.func @transform_2(%arg0: i32) -> (i32, i32) {
    %c0_i32 = arith.constant 0 : i32
    %c0_i32_0 = arith.constant 0 : i32
    return %arg0, %c0_i32 : i32, i32
  }
  func.func @transform_3(%arg0: i32) -> (i32, i32) {
    %c0_i32 = arith.constant 0 : i32
    %c0_i32_0 = arith.constant 0 : i32
    return %arg0, %c0_i32 : i32, i32
  }
  func.func @transform_4(%arg0: i32) -> (i32, i32) {
    %c0_i32 = arith.constant 0 : i32
    %c0_i32_0 = arith.constant 0 : i32
    return %arg0, %c0_i32 : i32, i32
  }
  func.func @transform_5(%arg0: i32) -> (i32, i32) {
    %c0_i32 = arith.constant 0 : i32
    %c0_i32_0 = arith.constant 0 : i32
    %c0_i32_1 = arith.constant 0 : i32
    return %c0_i32, %c0_i32_0 : i32, i32
  }
  func.func @transform_6(%arg0: i32) -> (i32, i32) {
    %c0_i32 = arith.constant 0 : i32
    %c0_i32_0 = arith.constant 0 : i32
    %c0_i32_1 = arith.constant 0 : i32
    return %c0_i32, %c0_i32_0 : i32, i32
  }
  func.func @transform_7(%arg0: i32) -> (i32, i32) {
    %c0_i32 = arith.constant 0 : i32
    %c0_i32_0 = arith.constant 0 : i32
    %c0_i32_1 = arith.constant 0 : i32
    return %c0_i32, %c0_i32_0 : i32, i32
  }
  func.func @transform_8(%arg0: i32) -> (i32, i32) {
    %c0_i32 = arith.constant 0 : i32
    %c0_i32_0 = arith.constant 0 : i32
    %c0_i32_1 = arith.constant 0 : i32
    return %c0_i32, %c0_i32_0 : i32, i32
  }
  func.func @transform_9(%arg0: i32) -> (i32, i32) {
    %c0_i32 = arith.constant 0 : i32
    %c0_i32_0 = arith.constant 0 : i32
    %c0_i32_1 = arith.constant 0 : i32
    return %c0_i32, %c0_i32_0 : i32, i32
  }
  func.func @transform_10(%arg0: i32) -> (i32, i32) {
    %c0_i32 = arith.constant 0 : i32
    %c0_i32_0 = arith.constant 0 : i32
    %c0_i32_1 = arith.constant 0 : i32
    return %c0_i32, %c0_i32_0 : i32, i32
  }
  func.func @transform_11(%arg0: i32) -> (i32, i32) {
    %c0_i32 = arith.constant 0 : i32
    %c0_i32_0 = arith.constant 0 : i32
    %c0_i32_1 = arith.constant 0 : i32
    return %c0_i32, %c0_i32_0 : i32, i32
  }
  func.func @transform_12(%arg0: i32) -> (i32, i32) {
    %c0_i32 = arith.constant 0 : i32
    %c0_i32_0 = arith.constant 0 : i32
    %c0_i32_1 = arith.constant 0 : i32
    return %c0_i32, %c0_i32_0 : i32, i32
  }
  func.func @transform_13(%arg0: i32) -> (i32, i32) {
    %c0_i32 = arith.constant 0 : i32
    %c0_i32_0 = arith.constant 0 : i32
    %c0_i32_1 = arith.constant 0 : i32
    return %c0_i32, %c0_i32_0 : i32, i32
  }
  func.func @transform_14(%arg0: i32) -> (i32, i32) {
    %c0_i32 = arith.constant 0 : i32
    %c0_i32_0 = arith.constant 0 : i32
    %c0_i32_1 = arith.constant 0 : i32
    return %c0_i32, %c0_i32_0 : i32, i32
  }
  func.func @transform_15(%arg0: i32) -> (i32, i32) {
    %c0_i32 = arith.constant 0 : i32
    %c0_i32_0 = arith.constant 0 : i32
    %c0_i32_1 = arith.constant 0 : i32
    return %c0_i32, %c0_i32_0 : i32, i32
  }
  func.func @transform_16(%arg0: i32) -> (i32, i32) {
    %c0_i32 = arith.constant 0 : i32
    %c0_i32_0 = arith.constant 0 : i32
    %c0_i32_1 = arith.constant 0 : i32
    return %c0_i32, %c0_i32_0 : i32, i32
  }
  func.func @transform_17(%arg0: i32) -> (i32, i32) {
    %c0_i32 = arith.constant 0 : i32
    %c0_i32_0 = arith.constant 0 : i32
    %c0_i32_1 = arith.constant 0 : i32
    return %c0_i32, %c0_i32_0 : i32, i32
  }
  func.func @transform_18(%arg0: i32) -> (i32, i32) {
    %c0_i32 = arith.constant 0 : i32
    %c0_i32_0 = arith.constant 0 : i32
    %c0_i32_1 = arith.constant 0 : i32
    return %c0_i32, %c0_i32_0 : i32, i32
  }
  func.func @transform_19(%arg0: i32) -> (i32, i32) {
    %c0_i32 = arith.constant 0 : i32
    %c0_i32_0 = arith.constant 0 : i32
    %c0_i32_1 = arith.constant 0 : i32
    return %c0_i32, %c0_i32_0 : i32, i32
  }
  func.func @transform_20(%arg0: i32) -> (i32, i32) {
    %c0_i32 = arith.constant 0 : i32
    %c0_i32_0 = arith.constant 0 : i32
    %c0_i32_1 = arith.constant 0 : i32
    return %c0_i32, %c0_i32_0 : i32, i32
  }
  func.func @transform_21(%arg0: i32) -> (i32, i32) {
    %c0_i32 = arith.constant 0 : i32
    %c0_i32_0 = arith.constant 0 : i32
    return %arg0, %c0_i32 : i32, i32
  }
}

</mosaic_0001>

<bundles_post_ra>
// kernel: tpu_custom_call.1
= control target key start
LH: loop header
LB: loop body
LE: loop exit
PB: predicated region body
PF: predicated region fallthrough
CT: control target
= control target key end

     0   :  { %vm1781_vm0 = vcmask 1040384   ;;  %vm1673_vm1 = vcmask 1042432   ;;  %vm1566_vm2 = vcmask 1044480   ;;  %vm1541_vm3 = vcmask 39936   ;;  %s4219_s5 = inlined_call_operand.vmem [shape: bf16[768,32], index: 5, kind: input, shape index: {}]   ;;  %s4220_s6 = inlined_call_operand.vmem [shape: f32[1,32], index: 6, kind: input, shape index: {}]   ;;  %s4221_s0 = inlined_call_operand.vmem [shape: bf16[64,768], index: 0, kind: input, shape index: {}]   ;;  %s4222_s7 = inlined_call_operand.vmem [shape: bf16[768,32], index: 7, kind: input, shape index: {}]   ;;  %s4223_s1 = inlined_call_operand.vmem [shape: bf16[64,768], index: 1, kind: input, shape index: {}]   ;;  %s4224_s8 = inlined_call_operand.vmem [shape: f32[1,32], index: 8, kind: input, shape index: {}]   ;;  %s4225_s13 = inlined_call_operand.vmem [shape: f32[9,32], index: 13, kind: input, shape index: {}]   ;;  %s4226_s11 = inlined_call_operand.vmem [shape: f32[3,32], index: 11, kind: input, shape index: {}]   ;;  %s4227_s9 = inlined_call_operand.vmem [shape: f32[5,32], index: 9, kind: input, shape index: {}]   ;;  %s4228_s16 = inlined_call_operand.vmem [shape: f32[32,48], index: 16, kind: input, shape index: {}]   ;;  %s4229_s2 = inlined_call_operand.vmem [shape: f32[64,5], index: 2, kind: input, shape index: {}]   ;;  %s4230_s3 = inlined_call_operand.vmem [shape: f32[64,3], index: 3, kind: input, shape index: {}]   ;;  %s4231_s4 = inlined_call_operand.vmem [shape: f32[64,9], index: 4, kind: input, shape index: {}]   ;;  %s4232_s10 = inlined_call_operand.vmem [shape: f32[1,32], index: 10, kind: input, shape index: {}]   ;;  %s4233_s12 = inlined_call_operand.vmem [shape: f32[1,32], index: 12, kind: input, shape index: {}]   ;;  %s4234_s14 = inlined_call_operand.vmem [shape: f32[1,32], index: 14, kind: input, shape index: {}]   ;;  %s4235_s15 = inlined_call_operand.vmem [shape: f32[32,48], index: 15, kind: input, shape index: {}]   ;;  %s4236_s18 = inlined_call_operand.vmem [shape: f32[32,48], index: 18, kind: input, shape index: {}]   ;;  %s4237_s19 = inlined_call_operand.vmem [shape: f32[32,48], index: 19, kind: input, shape index: {}]   ;;  %s4238_s17 = inlined_call_operand.vmem [shape: f32[32,48], index: 17, kind: input, shape index: {}]   ;;  %s4239_s20 = inlined_call_operand.vmem [shape: f32[1,48], index: 20, kind: input, shape index: {}]   ;;  %s4240_s21 = inlined_call_operand.vmem [shape: f32[64,48], index: 21, kind: output, shape index: {}]  }
   0x1   :  { %4245 = sst [smem:[#allocation2_spill]] %s4219_s5  ;;  %vm1648_vm4 = vcmask 23552   ;;  %vm1756_vm5 = vcmask 72704   ;;  %vm1858_vm7 = vcmask 261120  }
   0x2   :  { %4246 = sst [smem:[#allocation3_spill]] %s4220_s6 }
   0x3   :  { %4247 = sst [smem:[#allocation4_spill]] %s4221_s0 }
   0x4   :  { %4248 = sst [smem:[#allocation5_spill]] %s4222_s7 }
   0x5   :  { %4249 = sst [smem:[#allocation6_spill]] %s4223_s1 }
   0x6   :  { %4250 = sst [smem:[#allocation7_spill]] %s4224_s8 }
   0x7   :  { %s4251_s26 = sld [smem:[#allocation2_spill]] }
   0x8   :  { %s4252_s22 = sld [smem:[#allocation4_spill]] }
   0x9   :  { %s4253_s0 = sld [smem:[#allocation5_spill]] }
   0xa   :  { %s4254_s28 = sld [smem:[#allocation6_spill]] }
   0xb   :  { %s4255_s8 = sld [smem:[#allocation3_spill]] }
   0xd   :  { %v2943_v0 = vld [vmem:[%s4251_s26 + $0x38] sm:$0xff]  ;;  %v2942_v4 = vld [vmem:[%s4251_s26 + $0x30] sm:$0xff]  ;;  %v2941_v8 = vld [vmem:[%s4251_s26 + $0x28] sm:$0xff] }
   0xe   :  { %v2951_v1 = vld [vmem:[%s4251_s26 + $0x78] sm:$0xff]  ;;  %600 = vmatpush.bf16.msra.mxu0 %v2943_v0  ;;  %v2950_v5 = vld [vmem:[%s4251_s26 + $0x70] sm:$0xff]  ;;  %v2949_v9 = vld [vmem:[%s4251_s26 + $0x68] sm:$0xff] }
   0xf   :  { %v2959_v2 = vld [vmem:[%s4251_s26 + $0xb8] sm:$0xff]  ;;  %629 = vmatpush.bf16.msra.mxu1 %v2951_v1  ;;  %v2958_v6 = vld [vmem:[%s4251_s26 + $0xb0] sm:$0xff]  ;;  %v2957_v10 = vld [vmem:[%s4251_s26 + $0xa8] sm:$0xff] }
  0x10   :  { %v2967_v3 = vld [vmem:[%s4251_s26 + $0xf8] sm:$0xff]  ;;  %658 = vmatpush.bf16.msra.mxu2 %v2959_v2  ;;  %v2966_v7 = vld [vmem:[%s4251_s26 + $0xf0] sm:$0xff]  ;;  %v2965_v11 = vld [vmem:[%s4251_s26 + $0xe8] sm:$0xff] }
  0x11   :  { %687 = vmatpush.bf16.msra.mxu3 %v2967_v3  ;;  %v2940_v12 = vld [vmem:[%s4251_s26 + $0x20] sm:$0xff]  ;;  %v2939_v16 = vld [vmem:[%s4251_s26 + $0x18] sm:$0xff]  ;;  %v2938_v20 = vld [vmem:[%s4251_s26 + $0x10] sm:$0xff] }
  0x12   :  { %601 = vmatpush.bf16.msra.mxu0 %v2942_v4  ;;  %v2948_v13 = vld [vmem:[%s4251_s26 + $0x60] sm:$0xff]  ;;  %v2947_v17 = vld [vmem:[%s4251_s26 + $0x58] sm:$0xff]  ;;  %v2946_v21 = vld [vmem:[%s4251_s26 + $0x50] sm:$0xff] }
  0x13   :  { %630 = vmatpush.bf16.msra.mxu1 %v2950_v5  ;;  %v2956_v14 = vld [vmem:[%s4251_s26 + $0xa0] sm:$0xff]  ;;  %v2955_v18 = vld [vmem:[%s4251_s26 + $0x98] sm:$0xff]  ;;  %v2954_v22 = vld [vmem:[%s4251_s26 + $0x90] sm:$0xff] }
  0x14   :  { %659 = vmatpush.bf16.msra.mxu2 %v2958_v6  ;;  %v2964_v15 = vld [vmem:[%s4251_s26 + $0xe0] sm:$0xff]  ;;  %v2963_v19 = vld [vmem:[%s4251_s26 + $0xd8] sm:$0xff]  ;;  %v2962_v23 = vld [vmem:[%s4251_s26 + $0xd0] sm:$0xff] }
  0x15   :  { %688 = vmatpush.bf16.msra.mxu3 %v2966_v7  ;;  %v2937_v24 = vld [vmem:[%s4251_s26 + $0x8] sm:$0xff]  ;;  %v2936_v28 = vld [vmem:[%s4251_s26] sm:$0xff]  ;;  %v2915_v33 = vld [vmem:[%s4252_s22 + $0x14] sm:$0xf0] }
  0x16   :  { %602 = vmatpush.bf16.msra.mxu0 %v2941_v8  ;;  %v2945_v25 = vld [vmem:[%s4251_s26 + $0x48] sm:$0xff]  ;;  %v2944_v29 = vld [vmem:[%s4251_s26 + $0x40] sm:$0xff]  ;;  %v2273_v35 = vld [vmem:[%s4252_s22 + $0x18] sm:$0xf0] }
  0x17   :  { %631 = vmatpush.bf16.msra.mxu1 %v2949_v9  ;;  %v2953_v26 = vld [vmem:[%s4251_s26 + $0x88] sm:$0xff]  ;;  %v2952_v30 = vld [vmem:[%s4251_s26 + $0x80] sm:$0xff]  ;;  %v3015_v40 = vld [vmem:[%s4253_s0 + $0x38] sm:$0xff] }
  0x18   :  { %660 = vmatpush.bf16.msra.mxu2 %v2957_v10  ;;  %v2961_v27 = vld [vmem:[%s4251_s26 + $0xc8] sm:$0xff]  ;;  %v2960_v31 = vld [vmem:[%s4251_s26 + $0xc0] sm:$0xff]  ;;  %v2975_v41 = vld [vmem:[%s4251_s26 + $0x138] sm:$0xff] }
  0x19   :  { %689 = vmatpush.bf16.msra.mxu3 %v2965_v11  ;;  %v2271_v32 = vld [vmem:[%s4252_s22] sm:$0xf]  ;;  %v2912_v34 = vld [vmem:[%s4252_s22 + $0x4] sm:$0xf]  ;;  %v2279_v36 = vld [vmem:[%s4252_s22 + $0x8] sm:$0xf] }
  0x1a   :  { %603 = vmatpush.bf16.msra.mxu0 %v2940_v12  ;;  %v2916_v37 = vld [vmem:[%s4252_s22 + $0x1c] sm:$0xf0]  ;;  %v2913_v38 = vld [vmem:[%s4252_s22 + $0xc] sm:$0xf]  ;;  %v2281_v39 = vld [vmem:[%s4252_s22 + $0x20] sm:$0xf0]  ;;  %v2272_v42 = vor.u32 %v2915_v33, %v2271_v32  ;;  %v2276_v43 = vor.u32 %v2912_v34, %v2273_v35 }
  0x1b   :  { %632 = vmatpush.bf16.msra.mxu1 %v2948_v13  ;;  %v2280_v44 = vor.u32 %v2916_v37, %v2279_v36  ;;  %v2284_v45 = vor.u32 %v2913_v38, %v2281_v39  ;;  %v3023_v46 = vld [vmem:[%s4253_s0 + $0x78] sm:$0xff]  ;;  %v3014_v48 = vld [vmem:[%s4253_s0 + $0x30] sm:$0xff]  ;;  %v3013_v52 = vld [vmem:[%s4253_s0 + $0x28] sm:$0xff] }
  0x1c   :  { %661 = vmatpush.bf16.msra.mxu2 %v2956_v14  ;;  %v2983_v47 = vld [vmem:[%s4251_s26 + $0x178] sm:$0xff]  ;;  %v2974_v49 = vld [vmem:[%s4251_s26 + $0x130] sm:$0xff]  ;;  %v2973_v53 = vld [vmem:[%s4251_s26 + $0x128] sm:$0xff] }
  0x1d   :  { %690 = vmatpush.bf16.msra.mxu3 %v2964_v15  ;;  %v3022_v50 = vld [vmem:[%s4253_s0 + $0x70] sm:$0xff]  ;;  %v3021_v54 = vld [vmem:[%s4253_s0 + $0x68] sm:$0xff]  ;;  %v3012_v57 = vld [vmem:[%s4253_s0 + $0x20] sm:$0xff] }
  0x1e   :  { %604 = vmatpush.bf16.msra.mxu0 %v2939_v16  ;;  %v2982_v51 = vld [vmem:[%s4251_s26 + $0x170] sm:$0xff]  ;;  %v2981_v55 = vld [vmem:[%s4251_s26 + $0x168] sm:$0xff]  ;;  %v2972_v58 = vld [vmem:[%s4251_s26 + $0x120] sm:$0xff] }
  0x1f   :  { %633 = vmatpush.bf16.msra.mxu1 %v2947_v17  ;;  %v2295_v56 = vld [vmem:[%s4252_s22 + $0x30] sm:$0xf]  ;;  %v2921_v59 = vld [vmem:[%s4252_s22 + $0x44] sm:$0xf0]  ;;  %v2918_v60 = vld [vmem:[%s4252_s22 + $0x34] sm:$0xf] }
  0x20   :  { %662 = vmatpush.bf16.msra.mxu2 %v2955_v18  ;;  %v2297_v61 = vld [vmem:[%s4252_s22 + $0x48] sm:$0xf0]  ;;  %v2303_v62 = vld [vmem:[%s4252_s22 + $0x38] sm:$0xf]  ;;  %v2922_v63 = vld [vmem:[%s4252_s22 + $0x4c] sm:$0xf0]  ;;  %v2296_v6 = vor.u32 %v2921_v59, %v2295_v56 }
  0x21   :  { %691 = vmatpush.bf16.msra.mxu3 %v2963_v19  ;;  %v2919_v0 = vld [vmem:[%s4252_s22 + $0x3c] sm:$0xf]  ;;  %v2305_v1 = vld [vmem:[%s4252_s22 + $0x50] sm:$0xf0]  ;;  %v3020_v2 = vld [vmem:[%s4253_s0 + $0x60] sm:$0xff]  ;;  %v2300_v7 = vor.u32 %v2918_v60, %v2297_v61  ;;  %v2304_v8 = vor.u32 %v2922_v63, %v2303_v62 }
  0x22   :  { %605 = vmatpush.bf16.msra.mxu0 %v2938_v20  ;;  %v2980_v3 = vld [vmem:[%s4251_s26 + $0x160] sm:$0xff]  ;;  %v3011_v4 = vld [vmem:[%s4253_s0 + $0x18] sm:$0xff]  ;;  %v2308_v9 = vor.u32 %v2919_v0, %v2305_v1  ;;  %v3010_v12 = vld [vmem:[%s4253_s0 + $0x10] sm:$0xff] }
  0x23   :  { %634 = vmatpush.bf16.msra.mxu1 %v2946_v21  ;;  %v2971_v5 = vld [vmem:[%s4251_s26 + $0x118] sm:$0xff]  ;;  %v2970_v13 = vld [vmem:[%s4251_s26 + $0x110] sm:$0xff]  ;;  %v3009_v16 = vld [vmem:[%s4253_s0 + $0x8] sm:$0xff] }
  0x24   :  { %663 = vmatpush.bf16.msra.mxu2 %v2954_v22  ;;  %v3019_v10 = vld [vmem:[%s4253_s0 + $0x58] sm:$0xff]  ;;  %v3018_v14 = vld [vmem:[%s4253_s0 + $0x50] sm:$0xff]  ;;  %v2969_v17 = vld [vmem:[%s4251_s26 + $0x108] sm:$0xff] }
  0x25   :  { %692 = vmatpush.bf16.msra.mxu3 %v2962_v23  ;;  %v2979_v11 = vld [vmem:[%s4251_s26 + $0x158] sm:$0xff]  ;;  %v2978_v15 = vld [vmem:[%s4251_s26 + $0x150] sm:$0xff]  ;;  %v3017_v18 = vld [vmem:[%s4253_s0 + $0x48] sm:$0xff] }
  0x26   :  { %606 = vmatpush.bf16.msra.mxu0 %v2937_v24  ;;  %v2977_v19 = vld [vmem:[%s4251_s26 + $0x148] sm:$0xff]  ;;  %v2319_v20 = vld [vmem:[%s4252_s22 + $0x60] sm:$0xf]  ;;  %v2927_v23 = vld [vmem:[%s4252_s22 + $0x74] sm:$0xf0] }
  0x27   :  { %635 = vmatpush.bf16.msra.mxu1 %v2945_v25  ;;  %v3008_v21 = vld [vmem:[%s4253_s0] sm:$0xff]  ;;  %v2321_v25 = vld [vmem:[%s4252_s22 + $0x78] sm:$0xf0]  ;;  %v2320_v32 = vor.u32 %v2927_v23, %v2319_v20  ;;  %v3045_v56 = vld [vmem:[%s4253_s0 + $0x128] sm:$0xff] }
  0x28   :  { %664 = vmatpush.bf16.msra.mxu2 %v2953_v26  ;;  %v2968_v22 = vld [vmem:[%s4251_s26 + $0x100] sm:$0xff]  ;;  %v2327_v26 = vld [vmem:[%s4252_s22 + $0x68] sm:$0xf]  ;;  %v3047_v36 = vld [vmem:[%s4253_s0 + $0x138] sm:$0xff] }
  0x29   :  { %693 = vmatpush.bf16.msra.mxu3 %v2961_v27  ;;  %v2924_v24 = vld [vmem:[%s4252_s22 + $0x64] sm:$0xf]  ;;  %v2928_v27 = vld [vmem:[%s4252_s22 + $0x7c] sm:$0xf0]  ;;  %v3031_v37 = vld [vmem:[%s4253_s0 + $0xb8] sm:$0xff] }
  0x2a   :  { %607 = vmatpush.bf16.msra.mxu0 %v2936_v28  ;;  %v2925_v28 = vld [vmem:[%s4252_s22 + $0x6c] sm:$0xf]  ;;  %v2324_v33 = vor.u32 %v2924_v24, %v2321_v25  ;;  %v2328_v34 = vor.u32 %v2928_v27, %v2327_v26  ;;  %v3055_v38 = vld [vmem:[%s4253_s0 + $0x178] sm:$0xff]  ;;  %v3044_v60 = vld [vmem:[%s4253_s0 + $0x120] sm:$0xff] }
  0x2b   :  { %636 = vmatpush.bf16.msra.mxu1 %v2944_v29  ;;  %v2329_v29 = vld [vmem:[%s4252_s22 + $0x80] sm:$0xf0]  ;;  %v3039_v39 = vld [vmem:[%s4253_s0 + $0xf8] sm:$0xff]  ;;  %v3037_v59 = vld [vmem:[%s4253_s0 + $0xe8] sm:$0xff] }
  0x2c   :  { %665 = vmatpush.bf16.msra.mxu2 %v2952_v30  ;;  %v3016_v30 = vld [vmem:[%s4253_s0 + $0x40] sm:$0xff]  ;;  %v2332_v35 = vor.u32 %v2925_v28, %v2329_v29  ;;  %v2287_v0 = vld [vmem:[%s4252_s22 + $0x10] sm:$0xf]  ;;  %v2917_v1 = vld [vmem:[%s4252_s22 + $0x24] sm:$0xf0] }
  0x2d   :  { %694 = vmatpush.bf16.msra.mxu3 %v2960_v31  ;;  %608 = vmatmul.bf16.vlgmr.msra.gmra.mxu0 %v2272_v42  ;;  %v2976_v31 = vld [vmem:[%s4251_s26 + $0x140] sm:$0xff]  ;;  %v3054_v42 = vld [vmem:[%s4253_s0 + $0x170] sm:$0xff]  ;;  %v2313_v23 = vld [vmem:[%s4252_s22 + $0x58] sm:$0xf0] }
  0x2e   :  { %716 = vmatpush.bf16.msrb.mxu0 %v2975_v41  ;;  %637 = vmatmul.bf16.vlgmr.msra.gmra.mxu1 %v2276_v43  ;;  %v3030_v41 = vld [vmem:[%s4253_s0 + $0xb0] sm:$0xff]  ;;  %v3028_v61 = vld [vmem:[%s4253_s0 + $0xa0] sm:$0xff]  ;;  %v2993_v25 = vld [vmem:[%s4254_s28 + $0x44] sm:$0xf0] }
  0x2f   :  { %666 = vmatmul.bf16.vlgmr.msra.gmra.mxu2 %v2280_v44  ;;  %745 = vmatpush.bf16.msrb.mxu1 %v2983_v47  ;;  %v3038_v43 = vld [vmem:[%s4253_s0 + $0xf0] sm:$0xff]  ;;  %v2345_v47 = vld [vmem:[%s4252_s22 + $0xa8] sm:$0xf0]  ;;  %v3052_v62 = vld [vmem:[%s4253_s0 + $0x160] sm:$0xff] }
  0x30   :  { %1330 = vmatpush.bf16.msrb.mxu2 %v3015_v40  ;;  %695 = vmatmul.bf16.vlgmr.msra.gmra.mxu3 %v2284_v45  ;;  %v3046_v40 = vld [vmem:[%s4253_s0 + $0x130] sm:$0xff]  ;;  %v2933_v45 = vld [vmem:[%s4252_s22 + $0xa4] sm:$0xf0]  ;;  %v3036_v63 = vld [vmem:[%s4253_s0 + $0xe0] sm:$0xff] }
  0x31   :  { %1359 = vmatpush.bf16.msrb.mxu3 %v3023_v46  ;;  %v2343_v44 = vld [vmem:[%s4252_s22 + $0x90] sm:$0xf]  ;;  %v2930_v46 = vld [vmem:[%s4252_s22 + $0x94] sm:$0xf]  ;;  %v2311_v20 = vld [vmem:[%s4252_s22 + $0x40] sm:$0xf] }
  0x32   :  { %717 = vmatpush.bf16.msrb.mxu0 %v2974_v49  ;;  %v2934_v49 = vld [vmem:[%s4252_s22 + $0xac] sm:$0xf0]  ;;  %v2990_v26 = vld [vmem:[%s4254_s28 + $0x34] sm:$0xf]  ;;  %v2585_v27 = vld [vmem:[%s4254_s28 + $0x48] sm:$0xf0] }
  0x33   :  { %746 = vmatpush.bf16.msrb.mxu1 %v2982_v51  ;;  %v2353_v51 = vld [vmem:[%s4252_s22 + $0xb0] sm:$0xf0]  ;;  %v2583_v24 = vld [vmem:[%s4254_s28 + $0x30] sm:$0xf] }
  0x34   :  { %1331 = vmatpush.bf16.msrb.mxu2 %v3014_v48  ;;  %v2351_v48 = vld [vmem:[%s4252_s22 + $0x98] sm:$0xf] }
  0x35   :  { %1360 = vmatpush.bf16.msrb.mxu3 %v3022_v50  ;;  %v2931_v50 = vld [vmem:[%s4252_s22 + $0x9c] sm:$0xf] }
  0x36   :  { %718 = vmatpush.bf16.msrb.mxu0 %v2973_v53  ;;  %v2348_v53 = vor.u32 %v2930_v46, %v2345_v47  ;;  %v2996_v46 = vld [vmem:[%s4254_s28 + $0x64] sm:$0xf]  ;;  %v2609_v47 = vld [vmem:[%s4254_s28 + $0x78] sm:$0xf0] }
  0x37   :  { %747 = vmatpush.bf16.msrb.mxu1 %v2981_v55  ;;  %v2356_v55 = vor.u32 %v2931_v50, %v2353_v51  ;;  %v2612_v51 = vor.u32 %v2996_v46, %v2609_v47 }
  0x38   :  { %1332 = vmatpush.bf16.msrb.mxu2 %v3013_v52  ;;  %v2344_v52 = vor.u32 %v2933_v45, %v2343_v44  ;;  %v2607_v44 = vld [vmem:[%s4254_s28 + $0x60] sm:$0xf]  ;;  %v2999_v45 = vld [vmem:[%s4254_s28 + $0x74] sm:$0xf0] }
  0x39   :  { %1361 = vmatpush.bf16.msrb.mxu3 %v3021_v54  ;;  %v2352_v54 = vor.u32 %v2934_v49, %v2351_v48  ;;  %v2608_v50 = vor.u32 %v2999_v45, %v2607_v44 }
  0x3a   :  { %719 = vmatpush.bf16.msrb.mxu0 %v2972_v58  ;;  %v3053_v58 = vld [vmem:[%s4253_s0 + $0x168] sm:$0xff] }
  0x3b   :  { %748 = vmatpush.bf16.msrb.mxu1 %v2980_v3  ;;  %v2289_v3 = vld [vmem:[%s4252_s22 + $0x28] sm:$0xf0] }
  0x3c   :  { %1333 = vmatpush.bf16.msrb.mxu2 %v3012_v57  ;;  %v3029_v57 = vld [vmem:[%s4253_s0 + $0xa8] sm:$0xff] }
  0x3d   :  { %1362 = vmatpush.bf16.msrb.mxu3 %v3020_v2  ;;  %613 = vmatmul.bf16.gmra.mxu0 %v2296_v6  ;;  %v2914_v2 = vld [vmem:[%s4252_s22 + $0x14] sm:$0xf]  ;;  %v2984_v6 = vld [vmem:[%s4254_s28 + $0x4] sm:$0xf] }
  0x3e   :  { %720 = vmatpush.bf16.msrb.mxu0 %v2971_v5  ;;  %642 = vmatmul.bf16.gmra.mxu1 %v2300_v7  ;;  %v2987_v5 = vld [vmem:[%s4254_s28 + $0x14] sm:$0xf0]  ;;  %v2561_v7 = vld [vmem:[%s4254_s28 + $0x18] sm:$0xf0] }
  0x3f   :  { %671 = vmatmul.bf16.gmra.mxu2 %v2304_v8  ;;  %749 = vmatpush.bf16.msrb.mxu1 %v2979_v11  ;;  %v2288_v8 = vor.u32 %v2917_v1, %v2287_v0  ;;  %v2564_v11 = vor.u32 %v2984_v6, %v2561_v7  ;;  %v2985_v6 = vld [vmem:[%s4254_s28 + $0xc] sm:$0xf]  ;;  %v2569_v7 = vld [vmem:[%s4254_s28 + $0x20] sm:$0xf0] }
  0x40   :  { %1334 = vmatpush.bf16.msrb.mxu2 %v3011_v4  ;;  %700 = vmatmul.bf16.gmra.mxu3 %v2308_v9  ;;  %v2559_v4 = vld [vmem:[%s4254_s28] sm:$0xf]  ;;  %v2292_v9 = vor.u32 %v2914_v2, %v2289_v3 }
  0x41   :  { %1363 = vmatpush.bf16.msrb.mxu3 %v3019_v10  ;;  %v2560_v10 = vor.u32 %v2987_v5, %v2559_v4  ;;  %v3664_v3 = vld [vmem:[%s4255_s8] ss:$0 sm:$0xff]  ;;  %v2567_v4 = vld [vmem:[%s4254_s28 + $0x8] sm:$0xf] }
  0x42   :  { %721 = vmatpush.bf16.msrb.mxu0 %v2970_v13  ;;  %v3027_v13 = vld [vmem:[%s4253_s0 + $0x98] sm:$0xff]  ;;  %v2988_v5 = vld [vmem:[%s4254_s28 + $0x1c] sm:$0xf0] }
  0x43   :  { %750 = vmatpush.bf16.msrb.mxu1 %v2978_v15  ;;  %v3035_v15 = vld [vmem:[%s4253_s0 + $0xd8] sm:$0xff] }
  0x44   :  { %1335 = vmatpush.bf16.msrb.mxu2 %v3010_v12  ;;  %v3043_v12 = vld [vmem:[%s4253_s0 + $0x118] sm:$0xff] }
  0x45   :  { %1364 = vmatpush.bf16.msrb.mxu3 %v3018_v14  ;;  %v3051_v14 = vld [vmem:[%s4253_s0 + $0x158] sm:$0xff] }
  0x46   :  { %722 = vmatpush.bf16.msrb.mxu0 %v2969_v17  ;;  %v3026_v17 = vld [vmem:[%s4253_s0 + $0x90] sm:$0xff] }
  0x47   :  { %751 = vmatpush.bf16.msrb.mxu1 %v2977_v19  ;;  %v3034_v19 = vld [vmem:[%s4253_s0 + $0xd0] sm:$0xff] }
  0x48   :  { %1336 = vmatpush.bf16.msrb.mxu2 %v3009_v16  ;;  %v3042_v16 = vld [vmem:[%s4253_s0 + $0x110] sm:$0xff] }
  0x49   :  { %1365 = vmatpush.bf16.msrb.mxu3 %v3017_v18  ;;  %v3050_v18 = vld [vmem:[%s4253_s0 + $0x150] sm:$0xff] }
  0x4a   :  { %723 = vmatpush.bf16.msrb.mxu0 %v2968_v22  ;;  %v2920_v22 = vld [vmem:[%s4252_s22 + $0x44] sm:$0xf] }
  0x4b   :  { %752 = vmatpush.bf16.msrb.mxu1 %v2976_v31  ;;  %v2316_v29 = vor.u32 %v2920_v22, %v2313_v23  ;;  %v2588_v31 = vor.u32 %v2990_v26, %v2585_v27  ;;  %v2591_v27 = vld [vmem:[%s4254_s28 + $0x38] sm:$0xf] }
  0x4c   :  { %1337 = vmatpush.bf16.msrb.mxu2 %v3008_v21  ;;  %v2923_v21 = vld [vmem:[%s4252_s22 + $0x54] sm:$0xf0] }
  0x4d   :  { %1366 = vmatpush.bf16.msrb.mxu3 %v3016_v30  ;;  %618 = vmatmul.bf16.gmra.mxu0 %v2320_v32  ;;  %v2312_v28 = vor.u32 %v2923_v21, %v2311_v20  ;;  %v2584_v30 = vor.u32 %v2993_v25, %v2583_v24  ;;  %v3041_v32 = vld [vmem:[%s4253_s0 + $0x108] sm:$0xff]  ;;  %v1750_v20 = vld [vmem:[%s4225_s13] sm:$0xff] }
  0x4e   :  { %647 = vmatmul.bf16.gmra.mxu1 %v2324_v33  ;;  %1388 = vmatpush.bf16.msra.mxu0 %v3031_v37  ;;  %v3025_v33 = vld [vmem:[%s4253_s0 + $0x88] sm:$0xff]  ;;  %v3024_v37 = vld [vmem:[%s4253_s0 + $0x80] sm:$0xff] }
  0x4f   :  { %676 = vmatmul.bf16.gmra.mxu2 %v2328_v34  ;;  %1417 = vmatpush.bf16.msra.mxu1 %v3039_v39  ;;  %v3049_v34 = vld [vmem:[%s4253_s0 + $0x148] sm:$0xff]  ;;  %v3032_v39 = vld [vmem:[%s4253_s0 + $0xc0] sm:$0xff] }
  0x50   :  { %705 = vmatmul.bf16.gmra.mxu3 %v2332_v35  ;;  %1446 = vmatpush.bf16.msra.mxu2 %v3047_v36  ;;  %v3033_v35 = vld [vmem:[%s4253_s0 + $0xc8] sm:$0xff]  ;;  %v3040_v36 = vld [vmem:[%s4253_s0 + $0x100] sm:$0xff] }
  0x51   :  { %1475 = vmatpush.bf16.msra.mxu3 %v3055_v38  ;;  %v3048_v38 = vld [vmem:[%s4253_s0 + $0x140] sm:$0xff] }
  0x52   :  { %1389 = vmatpush.bf16.msra.mxu0 %v3030_v41  ;;  %v2929_v41 = vld [vmem:[%s4252_s22 + $0x84] sm:$0xf0] }
  0x53   :  { %1418 = vmatpush.bf16.msra.mxu1 %v3038_v43  ;;  %v2337_v43 = vld [vmem:[%s4252_s22 + $0x88] sm:$0xf0] }
  0x54   :  { %1447 = vmatpush.bf16.msra.mxu2 %v3046_v40  ;;  %v2335_v40 = vld [vmem:[%s4252_s22 + $0x70] sm:$0xf] }
  0x55   :  { %1476 = vmatpush.bf16.msra.mxu3 %v3054_v42  ;;  %v2926_v42 = vld [vmem:[%s4252_s22 + $0x74] sm:$0xf]  ;;  %v2336_v48 = vor.u32 %v2929_v41, %v2335_v40 }
  0x56   :  { %1390 = vmatpush.bf16.msra.mxu0 %v3029_v57  ;;  %v2340_v49 = vor.u32 %v2926_v42, %v2337_v43  ;;  %v2932_v57 = vld [vmem:[%s4252_s22 + $0xa4] sm:$0xf] }
  0x57   :  { %1419 = vmatpush.bf16.msra.mxu1 %v3037_v59  ;;  %v2631_v59 = vld [vmem:[%s4254_s28 + $0x90] sm:$0xf] }
  0x58   :  { %1448 = vmatpush.bf16.msra.mxu2 %v3045_v56  ;;  %v1536_v56 = vld [vmem:[%s4227_s9] sm:$0x1f] }
  0x59   :  { %1477 = vmatpush.bf16.msra.mxu3 %v3053_v58  ;;  %v2361_v58 = vld [vmem:[%s4252_s22 + $0xb8] sm:$0xf0] }
  0x5a   :  { %1391 = vmatpush.bf16.msra.mxu0 %v3028_v61  ;;  %v3002_v61 = vld [vmem:[%s4254_s28 + $0x94] sm:$0xf]  ;;  %v2364_v0 = vor.u32 %v2932_v57, %v2361_v58  ;;  %v2623_v57 = vld [vmem:[%s4254_s28 + $0x70] sm:$0xf]  ;;  %v3001_v58 = vld [vmem:[%s4254_s28 + $0x84] sm:$0xf0] }
  0x5b   :  { %1420 = vmatpush.bf16.msra.mxu1 %v3036_v63 }
  0x5c   :  { %1449 = vmatpush.bf16.msra.mxu2 %v3044_v60  ;;  %v3005_v60 = vld [vmem:[%s4254_s28 + $0xa4] sm:$0xf0] }
  0x5d   :  { %623 = vmatmul.bf16.gmra.mxu0 %v2344_v52  ;;  %1478 = vmatpush.bf16.msra.mxu3 %v3052_v62  ;;  %v1751_v52 = vld [vmem:[%s4225_s13 + $0x8] sm:$0x1]  ;;  %v2633_v62 = vld [vmem:[%s4254_s28 + $0xa8] sm:$0xf0]  ;;  %v2632_v1 = vor.u32 %v3005_v60, %v2631_v59  ;;  %v2998_v59 = vld [vmem:[%s4254_s28 + $0x74] sm:$0xf] }
  0x5e   :  { %652 = vmatmul.bf16.gmra.mxu1 %v2348_v53  ;;  %1392 = vmatpush.bf16.msra.mxu0 %v3027_v13  ;;  %v2359_v53 = vld [vmem:[%s4252_s22 + $0xa0] sm:$0xf]  ;;  %v2636_v2 = vor.u32 %v3002_v61, %v2633_v62  ;;  %v2572_v13 = vor.u32 %v2985_v6, %v2569_v7  ;;  %v2625_v60 = vld [vmem:[%s4254_s28 + $0x88] sm:$0xf0]  ;;  %v2624_v6 = vor.u32 %v3001_v58, %v2623_v57  ;;  %v1856_v57 = vld [vmem:[%s4228_s16 + $0x10] sm:$0xff] }
  0x5f   :  { %681 = vmatmul.bf16.gmra.mxu2 %v2352_v54  ;;  %1421 = vmatpush.bf16.msra.mxu1 %v3035_v15  ;;  %v2935_v54 = vld [vmem:[%s4252_s22 + $0xb4] sm:$0xf0]  ;;  %v2628_v7 = vor.u32 %v2998_v59, %v2625_v60 }
  0x60   :  { %710 = vmatmul.bf16.gmra.mxu3 %v2356_v55  ;;  %1450 = vmatpush.bf16.msra.mxu2 %v3043_v12  ;;  %v1643_v55 = vld [vmem:[%s4226_s11] sm:$0x7]  ;;  %v2360_v63 = vor.u32 %v2935_v54, %v2359_v53  ;;  %v2568_v12 = vor.u32 %v2988_v5, %v2567_v4  ;;  %v2615_v53 = vld [vmem:[%s4254_s28 + $0x68] sm:$0xf] }
  0x61   :  { %1479 = vmatpush.bf16.msra.mxu3 %v3051_v14  ;;  %v3000_v54 = vld [vmem:[%s4254_s28 + $0x7c] sm:$0xf0] }
  0x62   :  { %1393 = vmatpush.bf16.msra.mxu0 %v3026_v17 }
  0x63   :  { %1422 = vmatpush.bf16.msra.mxu1 %v3034_v19 }
  0x64   :  { %1451 = vmatpush.bf16.msra.mxu2 %v3042_v16 }
  0x65   :  { %1480 = vmatpush.bf16.msra.mxu3 %v3050_v18 }
  0x66   :  { %1394 = vmatpush.bf16.msra.mxu0 %v3025_v33  ;;  %v2992_v33 = vld [vmem:[%s4254_s28 + $0x44] sm:$0xf] }
  0x67   :  { %1423 = vmatpush.bf16.msra.mxu1 %v3033_v35 }
  0x68   :  { %1452 = vmatpush.bf16.msra.mxu2 %v3041_v32  ;;  %v2995_v32 = vld [vmem:[%s4254_s28 + $0x54] sm:$0xf0] }
  0x69   :  { %1481 = vmatpush.bf16.msra.mxu3 %v3049_v34  ;;  %v2601_v34 = vld [vmem:[%s4254_s28 + $0x58] sm:$0xf0] }
  0x6a   :  { %1395 = vmatpush.bf16.msra.mxu0 %v3024_v37  ;;  %v2604_v44 = vor.u32 %v2992_v33, %v2601_v34 }
  0x6b   :  { %1424 = vmatpush.bf16.msra.mxu1 %v3032_v39 }
  0x6c   :  { %1453 = vmatpush.bf16.msra.mxu2 %v3040_v36 }
  0x6d   :  { %724 = vmatmul.bf16.vlgmr.msrb.gmra.mxu0 %v2288_v8  ;;  %1482 = vmatpush.bf16.msra.mxu3 %v3048_v38  ;;  %v2575_v8 = vld [vmem:[%s4254_s28 + $0x10] sm:$0xf] }
  0x6e   :  { %753 = vmatmul.bf16.vlgmr.msrb.gmra.mxu1 %v2292_v9  ;;  %2845 = vmatpush.msk.msrb.mxu0 %vm1566_vm2, %v1536_v56  ;;  %v2989_v9 = vld [vmem:[%s4254_s28 + $0x24] sm:$0xf0]  ;;  %v2617_v56 = vld [vmem:[%s4254_s28 + $0x80] sm:$0xf0] }
  0x6f   :  { %1338 = vmatmul.bf16.vlgmr.msrb.gmra.mxu2 %v2560_v10  ;;  %2854 = vmatpush.msk.msrb.mxu1 %vm1673_vm1, %v1643_v55  ;;  %v2986_v10 = vld [vmem:[%s4254_s28 + $0x14] sm:$0xf]  ;;  %v2576_v16 = vor.u32 %v2989_v9, %v2575_v8  ;;  %v2997_v55 = vld [vmem:[%s4254_s28 + $0x6c] sm:$0xf] }
  0x70   :  { %1367 = vmatmul.bf16.vlgmr.msrb.gmra.mxu3 %v2564_v11  ;;  %2863 = vmatpush.msk.msrb.mxu2 %vm1781_vm0, %v1751_v52  ;;  %v2577_v11 = vld [vmem:[%s4254_s28 + $0x28] sm:$0xf0] }
  0x71   :  { %v2580_v17 = vor.u32 %v2986_v10, %v2577_v11 }
  0x72   :  { %1800 = vmatpush.msrb.mxu2 %v1750_v20  ;;  %v2647_v20 = vld [vmem:[%s4254_s28 + $0xa0] sm:$0xf] }
  0x7d   :  { %729 = vmatmul.bf16.gmra.mxu0 %v2312_v28  ;;  %v2994_v28 = vld [vmem:[%s4254_s28 + $0x4c] sm:$0xf0] }
  0x7e   :  { %758 = vmatmul.bf16.gmra.mxu1 %v2316_v29  ;;  %v2991_v29 = vld [vmem:[%s4254_s28 + $0x3c] sm:$0xf]  ;;  %v2592_v38 = vor.u32 %v2994_v28, %v2591_v27 }
  0x7f   :  { %1343 = vmatmul.bf16.gmra.mxu2 %v2584_v30  ;;  %v2593_v30 = vld [vmem:[%s4254_s28 + $0x50] sm:$0xf0] }
  0x80   :  { %1372 = vmatmul.bf16.gmra.mxu3 %v2588_v31  ;;  %v2599_v31 = vld [vmem:[%s4254_s28 + $0x40] sm:$0xf]  ;;  %v2596_v39 = vor.u32 %v2991_v29, %v2593_v30 }
  0x81   :  { %v2600_v43 = vor.u32 %v2995_v32, %v2599_v31 }
  0x8d   :  { %734 = vmatmul.bf16.gmra.mxu0 %v2336_v48 }
  0x8e   :  { %763 = vmatmul.bf16.gmra.mxu1 %v2340_v49 }
  0x8f   :  { %1348 = vmatmul.bf16.gmra.mxu2 %v2608_v50 }
  0x90   :  { %1377 = vmatmul.bf16.gmra.mxu3 %v2612_v51 }
  0x9d   :  { %739 = vmatmul.bf16.gmra.mxu0 %v2360_v63 }
  0x9e   :  { %768 = vmatmul.bf16.gmra.mxu1 %v2364_v0  ;;  %v2616_v0 = vor.u32 %v3000_v54, %v2615_v53 }
  0x9f   :  { %1353 = vmatmul.bf16.gmra.mxu2 %v2632_v1  ;;  %v2620_v1 = vor.u32 %v2997_v55, %v2617_v56  ;;  %v1635_v56 = vld [vmem:[%s4230_s3] sm:$0xff] }
  0xa0   :  { %1382 = vmatmul.bf16.gmra.mxu3 %v2636_v2 }
  0xaa   :  { %v609_v14 = vpop.f32.mrf.mxu0 }
  0xab   :  { %v638_v15 = vpop.f32.mrf.mxu1  ;;  %v610_v18 = vadd.f32 %v3664_v3, %v609_v14 }
  0xad   :  { %1396 = vmatmul.bf16.vlgmr.msra.gmra.mxu0 %v2568_v12  ;;  %v639_v19 = vadd.f32 %v638_v15, %v610_v18  ;;  %v3003_v18 = vld [vmem:[%s4254_s28 + $0x9c] sm:$0xf] }
  0xae   :  { %1425 = vmatmul.bf16.vlgmr.msra.gmra.mxu1 %v2572_v13 }
  0xaf   :  { %1454 = vmatmul.bf16.vlgmr.msra.gmra.mxu2 %v2576_v16  ;;  %v2639_v16 = vld [vmem:[%s4254_s28 + $0x98] sm:$0xf] }
  0xb0   :  { %1483 = vmatmul.bf16.vlgmr.msra.gmra.mxu3 %v2580_v17  ;;  %v3006_v17 = vld [vmem:[%s4254_s28 + $0xac] sm:$0xf0] }
  0xb1   :  { %v2640_v29 = vor.u32 %v3006_v17, %v2639_v16 }
  0xb2   :  { %v667_v21 = vpop.f32.mrf.mxu2  ;;  %v611_v24 = vpop.f32.mrf.mxu0 }
  0xb3   :  { %v3694_v22 = vpop.f32.mrf.mxu3  ;;  %v3696_v23 = vadd.f32 %v667_v21, %v639_v19  ;;  %v640_v25 = vpop.f32.mrf.mxu1  ;;  %v612_v26 = vadd.f32 %v3664_v3, %v611_v24  ;;  %v2641_v19 = vld [vmem:[%s4254_s28 + $0xb0] sm:$0xf0]  ;;  %v3007_v21 = vld [vmem:[%s4254_s28 + $0xb4] sm:$0xf0]  ;;  %v3004_v24 = vld [vmem:[%s4254_s28 + $0xa4] sm:$0xf] }
  0xb4   :  { %v2644_v30 = vor.u32 %v3003_v18, %v2641_v19  ;;  %v2648_v34 = vor.u32 %v3007_v21, %v2647_v20  ;;  %v1531_v18 = vld [vmem:[%s4229_s2 + $0x18] sm:$0xff] }
  0xb5   :  { %v641_v35 = vadd.f32 %v640_v25, %v612_v26  ;;  %v2649_v25 = vld [vmem:[%s4254_s28 + $0xb8] sm:$0xf0] }
  0xb6   :  { %v1638_v19 = vld [vmem:[%s4230_s3 + $0x18] sm:$0xff] }
  0xb7   :  { %v1745_v20 = vld [vmem:[%s4231_s4 + $0x18] sm:$0xff] }
  0xb8   :  { %v1853_v21 = vld [vmem:[%s4235_s15 + $0x18] sm:$0xff] }
  0xb9   :  { %1960 = vmatpush.msra.mxu0 %v1853_v21  ;;  %v1535_v21 = vld [vmem:[%s4229_s2 + $0x38] sm:$0xff] }
  0xba   :  { %v669_v36 = vpop.f32.mrf.mxu2  ;;  %v614_v41 = vpop.f32.mrf.mxu0 }
  0xbb   :  { %v3723_v37 = vpop.f32.mrf.mxu3  ;;  %v3725_v40 = vadd.f32 %v669_v36, %v641_v35  ;;  %v643_v42 = vpop.f32.mrf.mxu1  ;;  %v615_v45 = vadd.f32 %v3664_v3, %v614_v41  ;;  %v2652_v35 = vor.u32 %v3004_v24, %v2649_v25  ;;  %v1852_v24 = vld [vmem:[%s4235_s15 + $0x10] sm:$0xff] }
  0xbc   :  { %1961 = vmatpush.msra.mxu0 %v1852_v24  ;;  %v1749_v24 = vld [vmem:[%s4231_s4 + $0x38] sm:$0xff] }
  0xbd   :  { %1401 = vmatmul.bf16.gmra.mxu0 %v2592_v38  ;;  %v644_v46 = vadd.f32 %v643_v42, %v615_v45  ;;  %v1857_v38 = vld [vmem:[%s4228_s16 + $0x18] sm:$0xff] }
  0xbe   :  { %1430 = vmatmul.bf16.gmra.mxu1 %v2596_v39  ;;  %1895 = vmatpush.msrb.mxu3 %v1857_v38 }
  0xbf   :  { %1459 = vmatmul.bf16.gmra.mxu2 %v2600_v43 }
  0xc0   :  { %1488 = vmatmul.bf16.gmra.mxu3 %v2604_v44 }
  0xc1   :  { %1896 = vmatpush.msrb.mxu3 %v1856_v57 }
  0xc2   :  { %v672_v47 = vpop.f32.mrf.mxu2  ;;  %v616_v50 = vpop.f32.mrf.mxu0 }
  0xc3   :  { %v3728_v48 = vpop.f32.mrf.mxu3  ;;  %v3730_v49 = vadd.f32 %v672_v47, %v644_v46  ;;  %v645_v51 = vpop.f32.mrf.mxu1  ;;  %v617_v52 = vadd.f32 %v3664_v3, %v616_v50 }
  0xc5   :  { %v646_v61 = vadd.f32 %v645_v51, %v617_v52  ;;  %v1528_v52 = vld [vmem:[%s4229_s2] sm:$0xff] }
  0xca   :  { %v674_v62 = vpop.f32.mrf.mxu2  ;;  %v619_v4 = vpop.f32.mrf.mxu0 }
  0xcb   :  { %v3757_v63 = vpop.f32.mrf.mxu3  ;;  %v3759_v2 = vadd.f32 %v674_v62, %v646_v61  ;;  %v648_v5 = vpop.f32.mrf.mxu1  ;;  %v620_v8 = vadd.f32 %v3664_v3, %v619_v4  ;;  %v1529_v62 = vld [vmem:[%s4229_s2 + $0x8] sm:$0xff] }
  0xcd   :  { %1406 = vmatmul.bf16.gmra.mxu0 %v2616_v0  ;;  %v649_v9 = vadd.f32 %v648_v5, %v620_v8  ;;  %v1636_v0 = vld [vmem:[%s4230_s3 + $0x8] sm:$0xff]  ;;  %v1530_v8 = vld [vmem:[%s4229_s2 + $0x10] sm:$0xff] }
  0xce   :  { %1435 = vmatmul.bf16.gmra.mxu1 %v2620_v1  ;;  %v1743_v1 = vld [vmem:[%s4231_s4 + $0x8] sm:$0xff] }
  0xcf   :  { %1464 = vmatmul.bf16.gmra.mxu2 %v2624_v6 }
  0xd0   :  { %1493 = vmatmul.bf16.gmra.mxu3 %v2628_v7 }
  0xd2   :  { %v677_v10 = vpop.f32.mrf.mxu2  ;;  %v621_v13 = vpop.f32.mrf.mxu0 }
  0xd3   :  { %v3762_v11 = vpop.f32.mrf.mxu3  ;;  %v3764_v12 = vadd.f32 %v677_v10, %v649_v9  ;;  %v650_v14 = vpop.f32.mrf.mxu1  ;;  %v622_v15 = vadd.f32 %v3664_v3, %v621_v13  ;;  %v1637_v9 = vld [vmem:[%s4230_s3 + $0x10] sm:$0xff]  ;;  %v1855_v13 = vld [vmem:[%s4228_s16 + $0x8] sm:$0xff] }
  0xd4   :  { %v1744_v10 = vld [vmem:[%s4231_s4 + $0x10] sm:$0xff]  ;;  %1897 = vmatpush.msrb.mxu3 %v1855_v13 }
  0xd5   :  { %v651_v26 = vadd.f32 %v650_v14, %v622_v15 }
  0xda   :  { %v679_v27 = vpop.f32.mrf.mxu2  ;;  %v624_v32 = vpop.f32.mrf.mxu0 }
  0xdb   :  { %v3791_v28 = vpop.f32.mrf.mxu3  ;;  %v3793_v31 = vadd.f32 %v679_v27, %v651_v26  ;;  %v653_v33 = vpop.f32.mrf.mxu1  ;;  %v625_v36 = vadd.f32 %v3664_v3, %v624_v32  ;;  %v1639_v32 = vld [vmem:[%s4230_s3 + $0x20] sm:$0xff] }
  0xdd   :  { %1411 = vmatmul.bf16.gmra.mxu0 %v2640_v29  ;;  %v654_v39 = vadd.f32 %v653_v33, %v625_v36  ;;  %v1851_v33 = vld [vmem:[%s4235_s15 + $0x8] sm:$0xff]  ;;  %v1850_v36 = vld [vmem:[%s4235_s15] sm:$0xff] }
  0xde   :  { %1440 = vmatmul.bf16.gmra.mxu1 %v2644_v30  ;;  %v1532_v30 = vld [vmem:[%s4229_s2 + $0x20] sm:$0xff]  ;;  %1962 = vmatpush.msra.mxu0 %v1851_v33 }
  0xdf   :  { %1469 = vmatmul.bf16.gmra.mxu2 %v2648_v34  ;;  %v1746_v34 = vld [vmem:[%s4231_s4 + $0x20] sm:$0xff] }
  0xe0   :  { %1498 = vmatmul.bf16.gmra.mxu3 %v2652_v35  ;;  %v1854_v35 = vld [vmem:[%s4228_s16] sm:$0xff]  ;;  %1963 = vmatpush.msra.mxu0 %v1850_v36  ;;  %s4256_s16 = sld [smem:[#allocation7_spill]] }
  0xe1   :  { %1898 = vmatpush.msrb.mxu3 %v1854_v35 }
  0xe2   :  { %v682_v41 = vpop.f32.mrf.mxu2  ;;  %v626_v44 = vpop.f32.mrf.mxu0 }
  0xe3   :  { %v3799_v42 = vpop.f32.mrf.mxu3  ;;  %v3801_v43 = vadd.f32 %v682_v41, %v654_v39  ;;  %v655_v45 = vpop.f32.mrf.mxu1  ;;  %v627_v46 = vadd.f32 %v3664_v3, %v626_v44  ;;  %v1742_v3 = vld [vmem:[%s4231_s4] sm:$0xff] }
  0xe5   :  { %v656_v47 = vadd.f32 %v655_v45, %v627_v46  ;;  %v1533_v45 = vld [vmem:[%s4229_s2 + $0x28] sm:$0xff] }
  0xe6   :  { %v1640_v46 = vld [vmem:[%s4230_s3 + $0x28] sm:$0xff] }
  0xea   :  { %v684_v50 = vpop.f32.mrf.mxu2  ;;  %v3811_v54 = vpop.f32.mrf.mxu0 }
  0xeb   :  { %v3804_v51 = vpop.f32.mrf.mxu3  ;;  %v3809_v53 = vadd.f32 %v684_v50, %v656_v47  ;;  %v3813_v55 = vpop.f32.mrf.mxu1  ;;  %v1747_v47 = vld [vmem:[%s4231_s4 + $0x28] sm:$0xff]  ;;  %v2069_v50 = vld [vmem:[%s4236_s18 + $0x18] sm:$0xff] }
  0xec   :  { %2106 = vmatpush.msra.mxu2 %v2069_v50 }
  0xed   :  { %2846 = vmatmul.msk.f32.vlgmr.msrb.gmra.mxu0 %vm1541_vm3, %v1528_v52 }
  0xee   :  { %2855 = vmatmul.msk.f32.vlgmr.msrb.gmra.mxu1 %vm1648_vm4, %v1635_v56 }
  0xef   :  { %2864 = vmatmul.msk.f32.vlgmr.msrb.gmra.mxu2 %vm1756_vm5, %v1742_v3 }
  0xf2   :  { %v3827_v58 = vpop.f32.mrf.mxu2  ;;  %v3831_v60 = vpop.f32.mrf.mxu0 }
  0xf3   :  { %v3829_v59 = vpop.f32.mrf.mxu3  ;;  %v3833_v61 = vpop.f32.mrf.mxu1 }
  0xf5   :  { %2847 = vmatmul.msk.f32.gmra.mxu0 %vm1541_vm3, %v1529_v62  ;;  %v1534_v62 = vld [vmem:[%s4229_s2 + $0x30] sm:$0xff] }
  0xf6   :  { %2856 = vmatmul.msk.f32.gmra.mxu1 %vm1648_vm4, %v1636_v0  ;;  %v1641_v0 = vld [vmem:[%s4230_s3 + $0x30] sm:$0xff] }
  0xf7   :  { %2865 = vmatmul.msk.f32.gmra.mxu2 %vm1756_vm5, %v1743_v1  ;;  %v1748_v1 = vld [vmem:[%s4231_s4 + $0x30] sm:$0xff] }
  0xfa   :  { %v3847_v4 = vpop.f32.mrf.mxu2  ;;  %v3851_v6 = vpop.f32.mrf.mxu0 }
  0xfb   :  { %v3849_v5 = vpop.f32.mrf.mxu3  ;;  %v3853_v7 = vpop.f32.mrf.mxu1 }
  0xfd   :  { %2848 = vmatmul.msk.f32.gmra.mxu0 %vm1541_vm3, %v1530_v8  ;;  %v697_v8 = vadd.f32 %v3694_v22, %v3696_v23  ;;  %v3984_v22 = vld [vmem:[%s4256_s16] ss:$0 sm:$0xff] }
  0xfe   :  { %2857 = vmatmul.msk.f32.gmra.mxu1 %vm1648_vm4, %v1637_v9  ;;  %v2146_v9 = vld [vmem:[%s4237_s19 + $0x18] sm:$0xff]  ;;  %v1340_v33 = vadd.f32 %v3984_v22, %v3827_v58 }
  0xff   :  { %2866 = vmatmul.msk.f32.gmra.mxu2 %vm1756_vm5, %v1744_v10  ;;  %v1992_v10 = vld [vmem:[%s4238_s17 + $0x18] sm:$0xff]  ;;  %2183 = vmatpush.msra.mxu3 %v2146_v9  ;;  %v726_v13 = vadd.f32 %v3811_v54, %v697_v8 }
 0x100   :  { %2029 = vmatpush.msra.mxu1 %v1992_v10  ;;  %v1642_v54 = vld [vmem:[%s4230_s3 + $0x38] sm:$0xff] }
 0x102   :  { %v3870_v14 = vpop.f32.mrf.mxu2  ;;  %v3874_v16 = vpop.f32.mrf.mxu0 }
 0x103   :  { %v3872_v15 = vpop.f32.mrf.mxu3  ;;  %v3876_v17 = vpop.f32.mrf.mxu1 }
 0x105   :  { %2849 = vmatmul.msk.f32.gmra.mxu0 %vm1541_vm3, %v1531_v18 }
 0x106   :  { %2858 = vmatmul.msk.f32.gmra.mxu1 %vm1648_vm4, %v1638_v19 }
 0x107   :  { %2867 = vmatmul.msk.f32.gmra.mxu2 %vm1756_vm5, %v1745_v20 }
 0x10a   :  { %v3896_v25 = vpop.f32.mrf.mxu2  ;;  %v3900_v27 = vpop.f32.mrf.mxu0 }
 0x10b   :  { %v3898_v26 = vpop.f32.mrf.mxu3  ;;  %v3902_v29 = vpop.f32.mrf.mxu1 }
 0x10d   :  { %2850 = vmatmul.msk.f32.gmra.mxu0 %vm1541_vm3, %v1532_v30  ;;  %v755_v30 = vadd.f32 %v3813_v55, %v726_v13 }
 0x10e   :  { %2859 = vmatmul.msk.f32.gmra.mxu1 %vm1648_vm4, %v1639_v32  ;;  %v699_v32 = vadd.f32 %v3723_v37, %v3725_v40  ;;  %v1369_v37 = vadd.f32 %v3829_v59, %v1340_v33  ;;  %v1991_v59 = vld [vmem:[%s4238_s17 + $0x10] sm:$0xff] }
 0x10f   :  { %2868 = vmatmul.msk.f32.gmra.mxu2 %vm1756_vm5, %v1746_v34  ;;  %v2068_v34 = vld [vmem:[%s4236_s18 + $0x10] sm:$0xff]  ;;  %v782_v35 = vmul.f32 0.01, %v755_v30  ;;  %vm774_vm6 = vcmp.ge.f32.partialorder %v755_v30, 0.0  ;;  %2030 = vmatpush.msra.mxu1 %v1991_v59 }
 0x110   :  { %2107 = vmatpush.msra.mxu2 %v2068_v34  ;;  %v728_v55 = vadd.f32 %v3831_v60, %v699_v32  ;;  %v1342_v60 = vadd.f32 %v3984_v22, %v3847_v4  ;;  %v704_v32 = vadd.f32 %v3757_v63, %v3759_v2 }
 0x111   :  { %v790_v58 = vsel %vm774_vm6, %v755_v30, %v782_v35 }
 0x112   :  { %v3925_v38 = vpop.f32.mrf.mxu2  ;;  %v3929_v41 = vpop.f32.mrf.mxu0 }
 0x113   :  { %v3927_v39 = vpop.f32.mrf.mxu3  ;;  %v3931_v44 = vpop.f32.mrf.mxu1 }
 0x115   :  { %2851 = vmatmul.msk.f32.gmra.mxu0 %vm1541_vm3, %v1533_v45 }
 0x116   :  { %2860 = vmatmul.msk.f32.gmra.mxu1 %vm1648_vm4, %v1640_v46 }
 0x117   :  { %2869 = vmatmul.msk.f32.gmra.mxu2 %vm1756_vm5, %v1747_v47  ;;  %v757_v47 = vadd.f32 %v3833_v61, %v728_v55 }
 0x119   :  { %v783_v61 = vmul.f32 0.01, %v757_v47  ;;  %vm775_vm8 = vcmp.ge.f32.partialorder %v757_v47, 0.0 }
 0x11a   :  { %v3948_v52 = vpop.f32.mrf.mxu2  ;;  %v3952_v3 = vpop.f32.mrf.mxu0 }
 0x11b   :  { %v3950_v56 = vpop.f32.mrf.mxu3  ;;  %v3954_v57 = vpop.f32.mrf.mxu1  ;;  %v791_v30 = vsel %vm775_vm8, %v757_v47, %v783_v61 }
 0x11d   :  { %2852 = vmatmul.msk.f32.gmra.mxu0 %vm1541_vm3, %v1534_v62  ;;  %v702_v62 = vadd.f32 %v3728_v48, %v3730_v49  ;;  %v1371_v48 = vadd.f32 %v3849_v5, %v1342_v60  ;;  %v2067_v5 = vld [vmem:[%s4236_s18 + $0x8] sm:$0xff]  ;;  %v1347_v60 = vadd.f32 %v3984_v22, %v3896_v25 }
 0x11e   :  { %2861 = vmatmul.msk.f32.gmra.mxu1 %vm1648_vm4, %v1641_v0  ;;  %v2145_v0 = vld [vmem:[%s4237_s19 + $0x10] sm:$0xff]  ;;  %2108 = vmatpush.msra.mxu2 %v2067_v5 }
 0x11f   :  { %2870 = vmatmul.msk.f32.gmra.mxu2 %vm1756_vm5, %v1748_v1  ;;  %2184 = vmatpush.msra.mxu3 %v2145_v0  ;;  %v731_v1 = vadd.f32 %v3851_v6, %v702_v62  ;;  %v1345_v6 = vadd.f32 %v3984_v22, %v3870_v14  ;;  %v1376_v25 = vadd.f32 %v3898_v26, %v1347_v60  ;;  %v2066_v26 = vld [vmem:[%s4236_s18] sm:$0xff] }
 0x120   :  { %2109 = vmatpush.msra.mxu2 %v2066_v26 }
 0x121   :  { %v1374_v63 = vadd.f32 %v3872_v15, %v1345_v6  ;;  %v2144_v15 = vld [vmem:[%s4237_s19 + $0x8] sm:$0xff] }
 0x122   :  { %v3977_v18 = vpop.f32.mrf.mxu2  ;;  %v3986_v23 = vpop.f32.mrf.mxu0  ;;  %2185 = vmatpush.msra.mxu3 %v2144_v15 }
 0x123   :  { %v3979_v19 = vpop.f32.mrf.mxu3  ;;  %v3988_v20 = vpop.f32.mrf.mxu1 }
 0x125   :  { %2853 = vmatmul.msk.f32.gmra.mxu0 %vm1541_vm3, %v1535_v21  ;;  %v760_v21 = vadd.f32 %v3853_v7, %v731_v1  ;;  %v733_v7 = vadd.f32 %v3874_v16, %v704_v32  ;;  %v707_v16 = vadd.f32 %v3762_v11, %v3764_v12 }
 0x126   :  { %2862 = vmatmul.msk.f32.gmra.mxu1 %vm1648_vm4, %v1642_v54 }
 0x127   :  { %2871 = vmatmul.msk.f32.gmra.mxu2 %vm1756_vm5, %v1749_v24  ;;  %v784_v34 = vmul.f32 0.01, %v760_v21  ;;  %vm776_vm10 = vcmp.ge.f32.partialorder %v760_v21, 0.0  ;;  %v736_v61 = vadd.f32 %v3900_v27, %v707_v16  ;;  %v709_v27 = vadd.f32 %v3791_v28, %v3793_v31 }
 0x129   :  { %v792_v62 = vsel %vm776_vm10, %v760_v21, %v784_v34 }
 0x12a   :  { %v4011_v36 = vpop.f32.mrf.mxu2  ;;  %v1397_v40 = vpop.f32.mrf.mxu0 }
 0x12b   :  { %v4013_v45 = vpop.f32.mrf.mxu3  ;;  %v1426_v46 = vpop.f32.mrf.mxu1  ;;  %v1398_v50 = vadd.f32 %v1397_v40, %v1369_v37 }
 0x12d   :  { %2880 = vmatmul.msk.f32.vlgmr.msra.gmra.mxu0 %vm1858_vm7, %v790_v58  ;;  %v1427_v8 = vadd.f32 %v1426_v46, %v1398_v50  ;;  %v762_v58 = vadd.f32 %v3876_v17, %v733_v7  ;;  %v1990_v17 = vld [vmem:[%s4238_s17 + $0x8] sm:$0xff] }
 0x12e   :  { %2031 = vmatpush.msra.mxu1 %v1990_v17  ;;  %v1355_v17 = vadd.f32 %v3984_v22, %v3977_v18 }
 0x12f   :  { %v785_v59 = vmul.f32 0.01, %v762_v58  ;;  %vm777_vm12 = vcmp.ge.f32.partialorder %v762_v58, 0.0 }
 0x131   :  { %v793_v21 = vsel %vm777_vm12, %v762_v58, %v785_v59 }
 0x132   :  { %v1455_v9 = vpop.f32.mrf.mxu2  ;;  %v1399_v4 = vpop.f32.mrf.mxu0 }
 0x133   :  { %v1484_v10 = vpop.f32.mrf.mxu3  ;;  %v1456_v49 = vadd.f32 %v1455_v9, %v1427_v8  ;;  %v1428_v13 = vpop.f32.mrf.mxu1  ;;  %v1400_v24 = vadd.f32 %v1399_v4, %v1371_v48 }
 0x135   :  { %v1485_v54 = vadd.f32 %v1484_v10, %v1456_v49  ;;  %2881 = vmatmul.msk.f32.gmra.mxu0 %vm1858_vm7, %v791_v30  ;;  %v1429_v55 = vadd.f32 %v1428_v13, %v1400_v24  ;;  %v765_v49 = vadd.f32 %v3902_v29, %v736_v61  ;;  %v738_v29 = vadd.f32 %v3929_v41, %v709_v27 }
 0x136   :  { %v712_v41 = vadd.f32 %v3799_v42, %v3801_v43 }
 0x137   :  { %vm1504_vm9 = vcmp.ge.f32.partialorder %v1485_v54, 0.0  ;;  %v1512_v33 = vmul.f32 0.01, %v1485_v54  ;;  %v786_v30 = vmul.f32 0.01, %v765_v49  ;;  %vm778_vm14 = vcmp.ge.f32.partialorder %v765_v49, 0.0 }
 0x138   :  { %v767_v7 = vadd.f32 %v3931_v44, %v738_v29  ;;  %v1989_v44 = vld [vmem:[%s4238_s17] sm:$0xff] }
 0x139   :  { %v1520_v35 = vsel %vm1504_vm9, %v1485_v54, %v1512_v33  ;;  %v1350_v54 = vadd.f32 %v3984_v22, %v3925_v38  ;;  %2032 = vmatpush.msra.mxu1 %v1989_v44 }
 0x13a   :  { %v1457_v37 = vpop.f32.mrf.mxu2  ;;  %2872 = vmatmul.msk.f32.vlgmr.msrb.gmra.mxu3 %vm1858_vm7, %v1520_v35  ;;  %v1402_v14 = vpop.f32.mrf.mxu0  ;;  %vm779_vm0 = vcmp.ge.f32.partialorder %v767_v7, 0.0 }
 0x13b   :  { %v1486_v40 = vpop.f32.mrf.mxu3  ;;  %v1458_v2 = vadd.f32 %v1457_v37, %v1429_v55  ;;  %v1431_v46 = vpop.f32.mrf.mxu1  ;;  %v1403_v50 = vadd.f32 %v1402_v14, %v1374_v63  ;;  %v1379_v28 = vadd.f32 %v3927_v39, %v1350_v54  ;;  %v794_v37 = vsel %vm778_vm14, %v765_v49, %v786_v30  ;;  %v2143_v39 = vld [vmem:[%s4237_s19] sm:$0xff] }
 0x13c   :  { %2186 = vmatpush.msra.mxu3 %v2143_v39  ;;  %v741_v14 = vadd.f32 %v3952_v3, %v712_v41  ;;  %v714_v3 = vadd.f32 %v3804_v51, %v3809_v53 }
 0x13d   :  { %v1487_v47 = vadd.f32 %v1486_v40, %v1458_v2  ;;  %2882 = vmatmul.msk.f32.gmra.mxu0 %vm1858_vm7, %v792_v62  ;;  %v1432_v1 = vadd.f32 %v1431_v46, %v1403_v50  ;;  %v1352_v40 = vadd.f32 %v3984_v22, %v3948_v52  ;;  %v787_v2 = vmul.f32 0.01, %v767_v7 }
 0x13e   :  { %v770_v16 = vadd.f32 %v3954_v57, %v741_v14 }
 0x13f   :  { %vm1505_vm11 = vcmp.ge.f32.partialorder %v1487_v47, 0.0  ;;  %v1513_v0 = vmul.f32 0.01, %v1487_v47  ;;  %v1381_v52 = vadd.f32 %v3950_v56, %v1352_v40  ;;  %v795_v15 = vsel %vm779_vm0, %v767_v7, %v787_v2 }
 0x140   :  { %v788_v61 = vmul.f32 0.01, %v770_v16  ;;  %v743_v56 = vadd.f32 %v3986_v23, %v714_v3  ;;  %vm780_vm2 = vcmp.ge.f32.partialorder %v770_v16, 0.0  ;;  %v1357_v23 = vadd.f32 %v3984_v22, %v4011_v36  ;;  %v4103_v36 = vld [vmem:[%s4232_s10] ss:$0 sm:$0xff] }
 0x141   :  { %v1521_v11 = vsel %vm1505_vm11, %v1487_v47, %v1513_v0 }
 0x142   :  { %v1460_v12 = vpop.f32.mrf.mxu2  ;;  %2873 = vmatmul.msk.f32.gmra.mxu3 %vm1858_vm7, %v1521_v11  ;;  %v1404_v10 = vpop.f32.mrf.mxu0  ;;  %v772_v53 = vadd.f32 %v3988_v20, %v743_v56  ;;  %v1386_v20 = vadd.f32 %v4013_v45, %v1357_v23 }
 0x143   :  { %v1489_v8 = vpop.f32.mrf.mxu3  ;;  %v1461_v9 = vadd.f32 %v1460_v12, %v1432_v1  ;;  %v1433_v48 = vpop.f32.mrf.mxu1  ;;  %v1405_v13 = vadd.f32 %v1404_v10, %v1376_v25 }
 0x144   :  { %vm781_vm4 = vcmp.ge.f32.partialorder %v772_v53, 0.0 }
 0x145   :  { %v1490_v4 = vadd.f32 %v1489_v8, %v1461_v9  ;;  %2883 = vmatmul.msk.f32.gmra.mxu0 %vm1858_vm7, %v793_v21  ;;  %v1434_v32 = vadd.f32 %v1433_v48, %v1405_v13  ;;  %v1384_v8 = vadd.f32 %v3979_v19, %v1355_v17  ;;  %v796_v48 = vsel %vm780_vm2, %v770_v16, %v788_v61 }
 0x147   :  { %vm1506_vm13 = vcmp.ge.f32.partialorder %v1490_v4, 0.0  ;;  %v1514_v24 = vmul.f32 0.01, %v1490_v4 }
 0x149   :  { %v1522_v6 = vsel %vm1506_vm13, %v1490_v4, %v1514_v24  ;;  %v789_v4 = vmul.f32 0.01, %v772_v53 }
 0x14a   :  { %v1462_v33 = vpop.f32.mrf.mxu2  ;;  %2874 = vmatmul.msk.f32.gmra.mxu3 %vm1858_vm7, %v1522_v6  ;;  %v1407_v38 = vpop.f32.mrf.mxu0  ;;  %v4108_v6 = vld [vmem:[%s4233_s12] ss:$0 sm:$0xff] }
 0x14b   :  { %v1491_v5 = vpop.f32.mrf.mxu3  ;;  %v1463_v31 = vadd.f32 %v1462_v33, %v1434_v32  ;;  %v1436_v34 = vpop.f32.mrf.mxu1  ;;  %v1408_v55 = vadd.f32 %v1407_v38, %v1379_v28  ;;  %v797_v32 = vsel %vm781_vm4, %v772_v53, %v789_v4 }
 0x14d   :  { %v1492_v35 = vadd.f32 %v1491_v5, %v1463_v31  ;;  %2884 = vmatmul.msk.f32.gmra.mxu0 %vm1858_vm7, %v794_v37  ;;  %v1437_v46 = vadd.f32 %v1436_v34, %v1408_v55 }
 0x14f   :  { %vm1507_vm15 = vcmp.ge.f32.partialorder %v1492_v35, 0.0  ;;  %v1515_v63 = vmul.f32 0.01, %v1492_v35 }
 0x151   :  { %v1523_v58 = vsel %vm1507_vm15, %v1492_v35, %v1515_v63  ;;  %v4116_v63 = vld [vmem:[%s4234_s14] ss:$0 sm:$0xff] }
 0x152   :  { %v1465_v42 = vpop.f32.mrf.mxu2  ;;  %2875 = vmatmul.msk.f32.gmra.mxu3 %vm1858_vm7, %v1523_v58  ;;  %v1409_v50 = vpop.f32.mrf.mxu0 }
 0x153   :  { %v1494_v43 = vpop.f32.mrf.mxu3  ;;  %v1466_v47 = vadd.f32 %v1465_v42, %v1437_v46  ;;  %v1438_v62 = vpop.f32.mrf.mxu1  ;;  %v1410_v0 = vadd.f32 %v1409_v50, %v1381_v52 }
 0x155   :  { %v1495_v60 = vadd.f32 %v1494_v43, %v1466_v47  ;;  %2885 = vmatmul.msk.f32.gmra.mxu0 %vm1858_vm7, %v795_v15  ;;  %v1439_v1 = vadd.f32 %v1438_v62, %v1410_v0 }
 0x157   :  { %vm1508_vm1 = vcmp.ge.f32.partialorder %v1495_v60, 0.0  ;;  %v1516_v59 = vmul.f32 0.01, %v1495_v60 }
 0x159   :  { %v1524_v11 = vsel %vm1508_vm1, %v1495_v60, %v1516_v59 }
 0x15a   :  { %v1467_v12 = vpop.f32.mrf.mxu2  ;;  %2876 = vmatmul.msk.f32.gmra.mxu3 %vm1858_vm7, %v1524_v11  ;;  %v1412_v9 = vpop.f32.mrf.mxu0 }
 0x15b   :  { %v1496_v57 = vpop.f32.mrf.mxu3  ;;  %v1468_v25 = vadd.f32 %v1467_v12, %v1439_v1  ;;  %v1441_v51 = vpop.f32.mrf.mxu1  ;;  %v1413_v10 = vadd.f32 %v1412_v9, %v1384_v8 }
 0x15d   :  { %v1497_v18 = vadd.f32 %v1496_v57, %v1468_v25  ;;  %2886 = vmatmul.msk.f32.gmra.mxu0 %vm1858_vm7, %v796_v48  ;;  %v1442_v13 = vadd.f32 %v1441_v51, %v1413_v10 }
 0x15f   :  { %vm1509_vm3 = vcmp.ge.f32.partialorder %v1497_v18, 0.0  ;;  %v1517_v49 = vmul.f32 0.01, %v1497_v18 }
 0x161   :  { %v1525_v21 = vsel %vm1509_vm3, %v1497_v18, %v1517_v49 }
 0x162   :  { %v1470_v27 = vpop.f32.mrf.mxu2  ;;  %2877 = vmatmul.msk.f32.gmra.mxu3 %vm1858_vm7, %v1525_v21  ;;  %v1414_v24 = vpop.f32.mrf.mxu0 }
 0x163   :  { %v1499_v19 = vpop.f32.mrf.mxu3  ;;  %v1471_v54 = vadd.f32 %v1470_v27, %v1442_v13  ;;  %v1443_v26 = vpop.f32.mrf.mxu1  ;;  %v1415_v29 = vadd.f32 %v1414_v24, %v1386_v20 }
 0x165   :  { %v1500_v30 = vadd.f32 %v1499_v19, %v1471_v54  ;;  %2887 = vmatmul.msk.f32.gmra.mxu0 %vm1858_vm7, %v797_v32  ;;  %v1444_v45 = vadd.f32 %v1443_v26, %v1415_v29 }
 0x167   :  { %vm1510_vm5 = vcmp.ge.f32.partialorder %v1500_v30, 0.0  ;;  %v1518_v22 = vmul.f32 0.01, %v1500_v30 }
 0x169   :  { %v1526_v33 = vsel %vm1510_vm5, %v1500_v30, %v1518_v22 }
 0x16a   :  { %v1472_v5 = vpop.f32.mrf.mxu2  ;;  %2878 = vmatmul.msk.f32.gmra.mxu3 %vm1858_vm7, %v1526_v33  ;;  %v1587_v31 = vpop.f32.mrf.mxu0 }
 0x16b   :  { %v1473_v28 = vadd.f32 %v1472_v5, %v1444_v45  ;;  %v1694_v38 = vpop.f32.mrf.mxu1  ;;  %v1501_v34 = vpop.f32.mrf.mxu3  ;;  %v1588_v7 = vadd.f32 %v4103_v36, %v1587_v31 }
 0x16c   :  { %v1695_v35 = vadd.f32 %v4108_v6, %v1694_v38 }
 0x16d   :  { %v1502_v55 = vadd.f32 %v1501_v34, %v1473_v28  ;;  %vm1611_vm6 = vcmp.ge.f32.partialorder %v1588_v7, 0.0  ;;  %v1619_v37 = vmul.f32 0.01, %v1588_v7 }
 0x16e   :  { %vm1718_vm8 = vcmp.ge.f32.partialorder %v1695_v35, 0.0  ;;  %v1726_v41 = vmul.f32 0.01, %v1695_v35 }
 0x16f   :  { %vm1511_vm9 = vcmp.ge.f32.partialorder %v1502_v55, 0.0  ;;  %v1519_v40 = vmul.f32 0.01, %v1502_v55  ;;  %v1627_v39 = vsel %vm1611_vm6, %v1588_v7, %v1619_v37 }
 0x170   :  { %v1734_v44 = vsel %vm1718_vm8, %v1695_v35, %v1726_v41  ;;  %2888 = vmatmul.msk.f32.vlgmr.msra.gmra.mxu1 %vm1858_vm7, %v1627_v39 }
 0x171   :  { %v1527_v2 = vsel %vm1511_vm9, %v1502_v55, %v1519_v40  ;;  %2896 = vmatmul.msk.f32.vlgmr.msra.gmra.mxu2 %vm1858_vm7, %v1734_v44 }
 0x172   :  { %v1802_v14 = vpop.f32.mrf.mxu2  ;;  %2879 = vmatmul.msk.f32.gmra.mxu3 %vm1858_vm7, %v1527_v2  ;;  %v1590_v58 = vpop.f32.mrf.mxu0 }
 0x173   :  { %v1803_v46 = vadd.f32 %v4116_v63, %v1802_v14  ;;  %v1697_v42 = vpop.f32.mrf.mxu1  ;;  %v1591_v43 = vadd.f32 %v4103_v36, %v1590_v58 }
 0x174   :  { %v1698_v52 = vadd.f32 %v4108_v6, %v1697_v42 }
 0x175   :  { %vm1826_vm10 = vcmp.ge.f32.partialorder %v1803_v46, 0.0  ;;  %v1834_v47 = vmul.f32 0.01, %v1803_v46  ;;  %vm1612_vm11 = vcmp.ge.f32.partialorder %v1591_v43, 0.0  ;;  %v1620_v50 = vmul.f32 0.01, %v1591_v43 }
 0x176   :  { %vm1719_vm12 = vcmp.ge.f32.partialorder %v1698_v52, 0.0  ;;  %v1727_v62 = vmul.f32 0.01, %v1698_v52 }
 0x177   :  { %v1628_v16 = vsel %vm1612_vm11, %v1591_v43, %v1620_v50  ;;  %v1842_v0 = vsel %vm1826_vm10, %v1803_v46, %v1834_v47 }
 0x178   :  { %v1735_v60 = vsel %vm1719_vm12, %v1698_v52, %v1727_v62  ;;  %2889 = vmatmul.msk.f32.gmra.mxu1 %vm1858_vm7, %v1628_v16 }
 0x179   :  { %2897 = vmatmul.msk.f32.gmra.mxu2 %vm1858_vm7, %v1735_v60 }
 0x17a   :  { %v1805_v15 = vpop.f32.mrf.mxu2  ;;  %2904 = vmatmul.msk.f32.vlgmr.msra.gmra.mxu3 %vm1858_vm7, %v1842_v0  ;;  %v1593_v17 = vpop.f32.mrf.mxu0 }
 0x17b   :  { %v1806_v3 = vadd.f32 %v4116_v63, %v1805_v15  ;;  %v1700_v59 = vpop.f32.mrf.mxu1  ;;  %v1594_v61 = vadd.f32 %v4103_v36, %v1593_v17 }
 0x17c   :  { %v1701_v56 = vadd.f32 %v4108_v6, %v1700_v59 }
 0x17d   :  { %vm1827_vm13 = vcmp.ge.f32.partialorder %v1806_v3, 0.0  ;;  %v1835_v1 = vmul.f32 0.01, %v1806_v3  ;;  %vm1613_vm14 = vcmp.ge.f32.partialorder %v1594_v61, 0.0  ;;  %v1621_v11 = vmul.f32 0.01, %v1594_v61 }
 0x17e   :  { %vm1720_vm15 = vcmp.ge.f32.partialorder %v1701_v56, 0.0  ;;  %v1728_v12 = vmul.f32 0.01, %v1701_v56 }
 0x17f   :  { %v1629_v57 = vsel %vm1613_vm14, %v1594_v61, %v1621_v11  ;;  %v1843_v25 = vsel %vm1827_vm13, %v1806_v3, %v1835_v1 }
 0x180   :  { %v1736_v8 = vsel %vm1720_vm15, %v1701_v56, %v1728_v12  ;;  %2890 = vmatmul.msk.f32.gmra.mxu1 %vm1858_vm7, %v1629_v57 }
 0x181   :  { %2898 = vmatmul.msk.f32.gmra.mxu2 %vm1858_vm7, %v1736_v8 }
 0x182   :  { %v1808_v9 = vpop.f32.mrf.mxu2  ;;  %2905 = vmatmul.msk.f32.gmra.mxu3 %vm1858_vm7, %v1843_v25  ;;  %v1596_v53 = vpop.f32.mrf.mxu0 }
 0x183   :  { %v1809_v51 = vadd.f32 %v4116_v63, %v1808_v9  ;;  %v1703_v18 = vpop.f32.mrf.mxu1  ;;  %v1597_v10 = vadd.f32 %v4103_v36, %v1596_v53 }
 0x184   :  { %v1704_v48 = vadd.f32 %v4108_v6, %v1703_v18 }
 0x185   :  { %vm1828_vm0 = vcmp.ge.f32.partialorder %v1809_v51, 0.0  ;;  %v1836_v23 = vmul.f32 0.01, %v1809_v51  ;;  %vm1614_vm1 = vcmp.ge.f32.partialorder %v1597_v10, 0.0  ;;  %v1622_v49 = vmul.f32 0.01, %v1597_v10 }
 0x186   :  { %vm1721_vm2 = vcmp.ge.f32.partialorder %v1704_v48, 0.0  ;;  %v1729_v4 = vmul.f32 0.01, %v1704_v48 }
 0x187   :  { %v1630_v13 = vsel %vm1614_vm1, %v1597_v10, %v1622_v49  ;;  %v1844_v27 = vsel %vm1828_vm0, %v1809_v51, %v1836_v23  ;;  %vm2256_vm1 = vcmask 392192  }
 0x188   :  { %v1737_v21 = vsel %vm1721_vm2, %v1704_v48, %v1729_v4  ;;  %2891 = vmatmul.msk.f32.gmra.mxu1 %vm1858_vm7, %v1630_v13 }
 0x189   :  { %2899 = vmatmul.msk.f32.gmra.mxu2 %vm1858_vm7, %v1737_v21 }
 0x18a   :  { %v1811_v19 = vpop.f32.mrf.mxu2  ;;  %2906 = vmatmul.msk.f32.gmra.mxu3 %vm1858_vm7, %v1844_v27  ;;  %v1599_v54 = vpop.f32.mrf.mxu0 }
 0x18b   :  { %v1812_v20 = vadd.f32 %v4116_v63, %v1811_v19  ;;  %v1706_v24 = vpop.f32.mrf.mxu1  ;;  %v1600_v26 = vadd.f32 %v4103_v36, %v1599_v54 }
 0x18c   :  { %v1707_v30 = vadd.f32 %v4108_v6, %v1706_v24 }
 0x18d   :  { %vm1829_vm3 = vcmp.ge.f32.partialorder %v1812_v20, 0.0  ;;  %v1837_v29 = vmul.f32 0.01, %v1812_v20  ;;  %vm1615_vm4 = vcmp.ge.f32.partialorder %v1600_v26, 0.0  ;;  %v1623_v32 = vmul.f32 0.01, %v1600_v26 }
 0x18e   :  { %vm1722_vm5 = vcmp.ge.f32.partialorder %v1707_v30, 0.0  ;;  %v1730_v22 = vmul.f32 0.01, %v1707_v30 }
 0x18f   :  { %v1631_v45 = vsel %vm1615_vm4, %v1600_v26, %v1623_v32  ;;  %v1845_v5 = vsel %vm1829_vm3, %v1812_v20, %v1837_v29  ;;  %v4174_v29 = vld [vmem:[%s4239_s20] ss:$0 sm:$0xff] }
 0x190   :  { %v1738_v33 = vsel %vm1722_vm5, %v1707_v30, %v1730_v22  ;;  %2892 = vmatmul.msk.f32.gmra.mxu1 %vm1858_vm7, %v1631_v45 }
 0x191   :  { %2900 = vmatmul.msk.f32.gmra.mxu2 %vm1858_vm7, %v1738_v33 }
 0x192   :  { %v1814_v28 = vpop.f32.mrf.mxu2  ;;  %2907 = vmatmul.msk.f32.gmra.mxu3 %vm1858_vm7, %v1845_v5  ;;  %v1602_v38 = vpop.f32.mrf.mxu0 }
 0x193   :  { %v1815_v31 = vadd.f32 %v4116_v63, %v1814_v28  ;;  %v1709_v34 = vpop.f32.mrf.mxu1  ;;  %v1603_v7 = vadd.f32 %v4103_v36, %v1602_v38 }
 0x194   :  { %v1710_v35 = vadd.f32 %v4108_v6, %v1709_v34 }
 0x195   :  { %vm1830_vm6 = vcmp.ge.f32.partialorder %v1815_v31, 0.0  ;;  %v1838_v55 = vmul.f32 0.01, %v1815_v31  ;;  %vm1616_vm8 = vcmp.ge.f32.partialorder %v1603_v7, 0.0  ;;  %v1624_v37 = vmul.f32 0.01, %v1603_v7 }
 0x196   :  { %vm1723_vm9 = vcmp.ge.f32.partialorder %v1710_v35, 0.0  ;;  %v1731_v41 = vmul.f32 0.01, %v1710_v35 }
 0x197   :  { %v1632_v40 = vsel %vm1616_vm8, %v1603_v7, %v1624_v37  ;;  %v1846_v44 = vsel %vm1830_vm6, %v1815_v31, %v1838_v55 }
 0x198   :  { %v1739_v39 = vsel %vm1723_vm9, %v1710_v35, %v1731_v41  ;;  %2893 = vmatmul.msk.f32.gmra.mxu1 %vm1858_vm7, %v1632_v40 }
 0x199   :  { %2901 = vmatmul.msk.f32.gmra.mxu2 %vm1858_vm7, %v1739_v39 }
 0x19a   :  { %v1817_v2 = vpop.f32.mrf.mxu2  ;;  %2908 = vmatmul.msk.f32.gmra.mxu3 %vm1858_vm7, %v1846_v44  ;;  %v1605_v46 = vpop.f32.mrf.mxu0 }
 0x19b   :  { %v1818_v14 = vadd.f32 %v4116_v63, %v1817_v2  ;;  %v1712_v58 = vpop.f32.mrf.mxu1  ;;  %v1606_v42 = vadd.f32 %v4103_v36, %v1605_v46 }
 0x19c   :  { %v1713_v43 = vadd.f32 %v4108_v6, %v1712_v58 }
 0x19d   :  { %vm1831_vm10 = vcmp.ge.f32.partialorder %v1818_v14, 0.0  ;;  %v1839_v52 = vmul.f32 0.01, %v1818_v14  ;;  %vm1617_vm11 = vcmp.ge.f32.partialorder %v1606_v42, 0.0  ;;  %v1625_v47 = vmul.f32 0.01, %v1606_v42 }
 0x19e   :  { %vm1724_vm12 = vcmp.ge.f32.partialorder %v1713_v43, 0.0  ;;  %v1732_v50 = vmul.f32 0.01, %v1713_v43 }
 0x19f   :  { %v1633_v62 = vsel %vm1617_vm11, %v1606_v42, %v1625_v47  ;;  %v1847_v60 = vsel %vm1831_vm10, %v1818_v14, %v1839_v52 }
 0x1a0   :  { %v1740_v16 = vsel %vm1724_vm12, %v1713_v43, %v1732_v50  ;;  %2894 = vmatmul.msk.f32.gmra.mxu1 %vm1858_vm7, %v1633_v62 }
 0x1a1   :  { %2902 = vmatmul.msk.f32.gmra.mxu2 %vm1858_vm7, %v1740_v16 }
 0x1a2   :  { %v1820_v0 = vpop.f32.mrf.mxu2  ;;  %2909 = vmatmul.msk.f32.gmra.mxu3 %vm1858_vm7, %v1847_v60  ;;  %v1608_v3 = vpop.f32.mrf.mxu0 }
 0x1a3   :  { %v1821_v15 = vadd.f32 %v4116_v63, %v1820_v0  ;;  %v1715_v17 = vpop.f32.mrf.mxu1  ;;  %v1609_v59 = vadd.f32 %v4103_v36, %v1608_v3 }
 0x1a4   :  { %v1716_v61 = vadd.f32 %v4108_v6, %v1715_v17 }
 0x1a5   :  { %vm1832_vm13 = vcmp.ge.f32.partialorder %v1821_v15, 0.0  ;;  %v1840_v56 = vmul.f32 0.01, %v1821_v15  ;;  %vm1618_vm14 = vcmp.ge.f32.partialorder %v1609_v59, 0.0  ;;  %v1626_v1 = vmul.f32 0.01, %v1609_v59 }
 0x1a6   :  { %vm1725_vm15 = vcmp.ge.f32.partialorder %v1716_v61, 0.0  ;;  %v1733_v11 = vmul.f32 0.01, %v1716_v61 }
 0x1a7   :  { %v1634_v12 = vsel %vm1618_vm14, %v1609_v59, %v1626_v1  ;;  %v1848_v8 = vsel %vm1832_vm13, %v1821_v15, %v1840_v56 }
 0x1a8   :  { %v1741_v57 = vsel %vm1725_vm15, %v1716_v61, %v1733_v11  ;;  %2895 = vmatmul.msk.f32.gmra.mxu1 %vm1858_vm7, %v1634_v12 }
 0x1a9   :  { %2903 = vmatmul.msk.f32.gmra.mxu2 %vm1858_vm7, %v1741_v57 }
 0x1aa   :  { %v1823_v25 = vpop.f32.mrf.mxu2  ;;  %2910 = vmatmul.msk.f32.gmra.mxu3 %vm1858_vm7, %v1848_v8  ;;  %v1965_v49 = vpop.f32.mrf.mxu0 }
 0x1ab   :  { %v1824_v36 = vadd.f32 %v4116_v63, %v1823_v25 }
 0x1ad   :  { %v1841_v9 = vmul.f32 0.01, %v1824_v36  ;;  %vm1833_vm0 = vcmp.ge.f32.partialorder %v1824_v36, 0.0 }
 0x1af   :  { %v1849_v6 = vsel %vm1833_vm0, %v1824_v36, %v1841_v9 }
 0x1b2   :  { %2911 = vmatmul.msk.f32.gmra.mxu3 %vm1858_vm7, %v1849_v6  ;;  %v1968_v21 = vpop.f32.mrf.mxu0 }
 0x1ba   :  { %v1971_v24 = vpop.f32.mrf.mxu0 }
 0x1bd   :  { %v1900_v51 = vpop.f32.mrf.mxu3 }
 0x1be   :  { %v1966_v20 = vadd.f32 %v1965_v49, %v1900_v51 }
 0x1c2   :  { %v1974_v55 = vpop.f32.mrf.mxu0 }
 0x1c5   :  { %v1903_v53 = vpop.f32.mrf.mxu3 }
 0x1c6   :  { %v1969_v33 = vadd.f32 %v1968_v21, %v1903_v53 }
 0x1ca   :  { %v1977_v52 = vpop.f32.mrf.mxu0 }
 0x1cd   :  { %v1906_v18 = vpop.f32.mrf.mxu3 }
 0x1ce   :  { %v1972_v40 = vadd.f32 %v1971_v24, %v1906_v18 }
 0x1d2   :  { %v1980_v1 = vpop.f32.mrf.mxu0 }
 0x1d5   :  { %v1909_v10 = vpop.f32.mrf.mxu3 }
 0x1d6   :  { %v1975_v47 = vadd.f32 %v1974_v55, %v1909_v10 }
 0x1dd   :  { %v1912_v48 = vpop.f32.mrf.mxu3 }
 0x1de   :  { %v1978_v61 = vadd.f32 %v1977_v52, %v1912_v48  ;;  %v1983_v48 = vpop.f32.mrf.mxu0 }
 0x1e5   :  { %v4165_v23 = vpop.f32.mrf.mxu3 }
 0x1e6   :  { %v1981_v51 = vadd.f32 %v1980_v1, %v4165_v23 }
 0x1ed   :  { %v4167_v4 = vpop.f32.mrf.mxu3  ;;  %v2034_v13 = vpop.f32.mrf.mxu1 }
 0x1ee   :  { %v2058_v54 = vadd.f32 %v2034_v13, %v1966_v20 }
 0x1f4   :  { %v2111_v27 = vpop.f32.mrf.mxu2 }
 0x1f5   :  { %v4169_v19 = vpop.f32.mrf.mxu3  ;;  %v2037_v63 = vpop.f32.mrf.mxu1  ;;  %v2135_v26 = vadd.f32 %v2111_v27, %v2058_v54  ;;  %v1984_v54 = vadd.f32 %v1983_v48, %v4167_v4 }
 0x1f6   :  { %v2059_v28 = vadd.f32 %v2037_v63, %v1969_v33  ;;  %v1986_v33 = vpop.f32.mrf.mxu0 }
 0x1fc   :  { %v2114_v30 = vpop.f32.mrf.mxu2 }
 0x1fd   :  { %v2188_v32 = vpop.f32.mrf.mxu3  ;;  %v2040_v45 = vpop.f32.mrf.mxu1  ;;  %v2136_v38 = vadd.f32 %v2114_v30, %v2059_v28  ;;  %v1987_v28 = vadd.f32 %v1986_v33, %v4169_v19 }
 0x1fe   :  { %v2212_v22 = vadd.f32 %v2188_v32, %v2135_v26  ;;  %v2060_v44 = vadd.f32 %v2040_v45, %v1972_v40 }
 0x200   :  { %v2224_v5 = vadd.f32 %v4174_v29, %v2212_v22 }
 0x202   :  { %vm2232_vm7 = vcmp.ge.f32.partialorder %v2224_v5, 0.0  ;;  %v2240_v31 = vmul.f32 0.01, %v2224_v5 }
 0x204   :  { %v2248_v34 = vsel %vm2232_vm7, %v2224_v5, %v2240_v31  ;;  %v2117_v7 = vpop.f32.mrf.mxu2 }
 0x205   :  { %2257 = vst.msk [vmem:[%s4240_s21] sm:$0xff] %vm2256_vm1, %v2248_v34  ;;  %v2191_v35 = vpop.f32.mrf.mxu3  ;;  %v2043_v41 = vpop.f32.mrf.mxu1  ;;  %v2137_v14 = vadd.f32 %v2117_v7, %v2060_v44 }
 0x206   :  { %v2213_v37 = vadd.f32 %v2191_v35, %v2136_v38  ;;  %v2061_v16 = vadd.f32 %v2043_v41, %v1975_v47 }
 0x208   :  { %v2225_v39 = vadd.f32 %v4174_v29, %v2213_v37 }
 0x20a   :  { %vm2233_vm2 = vcmp.ge.f32.partialorder %v2225_v39, 0.0  ;;  %v2241_v2 = vmul.f32 0.01, %v2225_v39 }
 0x20c   :  { %v2249_v46 = vsel %vm2233_vm2, %v2225_v39, %v2241_v2  ;;  %v2120_v58 = vpop.f32.mrf.mxu2 }
 0x20d   :  { %2258 = vst.msk [vmem:[%s4240_s21 + $0x8] sm:$0xff] %vm2256_vm1, %v2249_v46  ;;  %v2194_v42 = vpop.f32.mrf.mxu3  ;;  %v2046_v62 = vpop.f32.mrf.mxu1  ;;  %v2138_v0 = vadd.f32 %v2120_v58, %v2061_v16 }
 0x20e   :  { %v2214_v43 = vadd.f32 %v2194_v42, %v2137_v14  ;;  %v2062_v11 = vadd.f32 %v2046_v62, %v1978_v61 }
 0x210   :  { %v2226_v50 = vadd.f32 %v4174_v29, %v2214_v43 }
 0x212   :  { %vm2234_vm3 = vcmp.ge.f32.partialorder %v2226_v50, 0.0  ;;  %v2242_v60 = vmul.f32 0.01, %v2226_v50 }
 0x214   :  { %v2250_v15 = vsel %vm2234_vm3, %v2226_v50, %v2242_v60  ;;  %v2123_v3 = vpop.f32.mrf.mxu2 }
 0x215   :  { %2259 = vst.msk [vmem:[%s4240_s21 + $0x10] sm:$0xff] %vm2256_vm1, %v2250_v15  ;;  %v2197_v17 = vpop.f32.mrf.mxu3  ;;  %v2049_v57 = vpop.f32.mrf.mxu1  ;;  %v2139_v8 = vadd.f32 %v2123_v3, %v2062_v11 }
 0x216   :  { %v2215_v59 = vadd.f32 %v2197_v17, %v2138_v0  ;;  %v2063_v18 = vadd.f32 %v2049_v57, %v1981_v51 }
 0x218   :  { %v2227_v56 = vadd.f32 %v4174_v29, %v2215_v59 }
 0x21a   :  { %vm2235_vm4 = vcmp.ge.f32.partialorder %v2227_v56, 0.0  ;;  %v2243_v12 = vmul.f32 0.01, %v2227_v56 }
 0x21c   :  { %v2251_v25 = vsel %vm2235_vm4, %v2227_v56, %v2243_v12  ;;  %v2126_v36 = vpop.f32.mrf.mxu2 }
 0x21d   :  { %2260 = vst.msk [vmem:[%s4240_s21 + $0x18] sm:$0xff] %vm2256_vm1, %v2251_v25  ;;  %v2200_v9 = vpop.f32.mrf.mxu3  ;;  %v2140_v49 = vadd.f32 %v2126_v36, %v2063_v18  ;;  %v2052_v21 = vpop.f32.mrf.mxu1 }
 0x21e   :  { %v2216_v6 = vadd.f32 %v2200_v9, %v2139_v8  ;;  %v2064_v24 = vadd.f32 %v2052_v21, %v1984_v54 }
 0x220   :  { %v2228_v53 = vadd.f32 %v4174_v29, %v2216_v6 }
 0x222   :  { %vm2236_vm5 = vcmp.ge.f32.partialorder %v2228_v53, 0.0  ;;  %v2244_v10 = vmul.f32 0.01, %v2228_v53 }
 0x224   :  { %v2252_v13 = vsel %vm2236_vm5, %v2228_v53, %v2244_v10  ;;  %v2129_v20 = vpop.f32.mrf.mxu2 }
 0x225   :  { %2261 = vst.msk [vmem:[%s4240_s21 + $0x20] sm:$0xff] %vm2256_vm1, %v2252_v13  ;;  %v2203_v27 = vpop.f32.mrf.mxu3  ;;  %v2141_v30 = vadd.f32 %v2129_v20, %v2064_v24  ;;  %v2055_v5 = vpop.f32.mrf.mxu1 }
 0x226   :  { %v2217_v63 = vadd.f32 %v2203_v27, %v2140_v49  ;;  %v2065_v38 = vadd.f32 %v2055_v5, %v1987_v28 }
 0x228   :  { %v2229_v23 = vadd.f32 %v4174_v29, %v2217_v63 }
 0x22a   :  { %vm2237_vm6 = vcmp.ge.f32.partialorder %v2229_v23, 0.0  ;;  %v2245_v26 = vmul.f32 0.01, %v2229_v23 }
 0x22c   :  { %v2253_v32 = vsel %vm2237_vm6, %v2229_v23, %v2245_v26  ;;  %v2132_v31 = vpop.f32.mrf.mxu2 }
 0x22d   :  { %2262 = vst.msk [vmem:[%s4240_s21 + $0x28] sm:$0xff] %vm2256_vm1, %v2253_v32  ;;  %v2206_v22 = vpop.f32.mrf.mxu3  ;;  %v2142_v7 = vadd.f32 %v2132_v31, %v2065_v38 }
 0x22e   :  { %v2218_v45 = vadd.f32 %v2206_v22, %v2141_v30 }
 0x230   :  { %v2230_v4 = vadd.f32 %v4174_v29, %v2218_v45 }
 0x232   :  { %vm2238_vm8 = vcmp.ge.f32.partialorder %v2230_v4, 0.0  ;;  %v2246_v34 = vmul.f32 0.01, %v2230_v4 }
 0x234   :  { %v2254_v35 = vsel %vm2238_vm8, %v2230_v4, %v2246_v34 }
 0x235   :  { %2263 = vst.msk [vmem:[%s4240_s21 + $0x30] sm:$0xff] %vm2256_vm1, %v2254_v35  ;;  %v2209_v55 = vpop.f32.mrf.mxu3 }
 0x236   :  { %v2219_v37 = vadd.f32 %v2209_v55, %v2142_v7 }
 0x238   :  { %v2231_v41 = vadd.f32 %v4174_v29, %v2219_v37 }
 0x23a   :  { %vm2239_vm9 = vcmp.ge.f32.partialorder %v2231_v41, 0.0  ;;  %v2247_v40 = vmul.f32 0.01, %v2231_v41 }
 0x23c   :  { %v2255_v19 = vsel %vm2239_vm9, %v2231_v41, %v2247_v40 }
 0x23d   :  { %2264 = vst.msk [vmem:[%s4240_s21 + $0x38] sm:$0xff] %vm2256_vm1, %v2255_v19 }

</bundles_post_ra>
